<compile_context>
chip_gen: v7x
topology: tpu7x:2x2x1
jax: 0.10.0
libtpu: 0.0.40
codegen_flags: <defaults>
</compile_context>

<pallas_src>
import math

import jax
import jax.numpy as jnp
from jax.experimental import pallas as pl
from jax.experimental.pallas import tpu as pltpu

# ----------------------------- model config (small) -------------------------------
B = 2            # batch
S = 8            # sequence length
H = 32           # hidden size
F = 64           # FFN intermediate size
NUM_HEADS = 4
DH = H // NUM_HEADS
NUM_LAYERS = 2
VOCAB = 100
LN_EPS = 1e-12   # BERT layernorm eps
SCALE = 1.0 / math.sqrt(DH)

WEIGHT_KEYS = ("wqkv", "bqkv", "wo", "bo", "ln1_g", "ln1_b",
               "w1", "b1", "w2", "b2", "ln2_g", "ln2_b")


def _layer_norm(x, gamma, beta, eps=LN_EPS):
    mean = jnp.mean(x, axis=-1, keepdims=True)
    var = jnp.mean(jnp.square(x - mean), axis=-1, keepdims=True)
    inv = jax.lax.rsqrt(var + eps)
    return (x - mean) * inv * gamma + beta


# ----------------------------- fused Pallas kernel ---------------------------------
def text_encoder_kernel(x_ref, pos_ref, typ_ref, eg_ref, eb_ref,
                        wqkv_ref, bqkv_ref, wo_ref, bo_ref,
                        ln1_g_ref, ln1_b_ref, w1_ref, b1_ref,
                        w2_ref, b2_ref, ln2_g_ref, ln2_b_ref,
                        o_ref):
    # x_ref: (S, H) activations for one batch element (word embeddings only).
    # Embedding sum (word + positional + token_type==0) and embedding LayerNorm.
    x = x_ref[...] + pos_ref[...] + typ_ref[...]
    x = _layer_norm(x, eg_ref[...], eb_ref[...])

    # NUM_LAYERS == 2: statically unrolled; all layer weights are resident in VMEM.
    for li in range(NUM_LAYERS):
        # ---- multi-head self-attention (fused QKV matmul, batched heads) ----
        qkv = jnp.dot(x, wqkv_ref[li], preferred_element_type=jnp.float32) + bqkv_ref[li]
        q = qkv[:, :H] * SCALE            # fold 1/sqrt(dh) into q once
        k = qkv[:, H:2 * H]
        v = qkv[:, 2 * H:]

        # (NUM_HEADS, S, DH) head-major slabs; two batched contractions + one softmax.
        qh = jnp.stack([q[:, h * DH:(h + 1) * DH] for h in range(NUM_HEADS)], axis=0)
        kh = jnp.stack([k[:, h * DH:(h + 1) * DH] for h in range(NUM_HEADS)], axis=0)
        vh = jnp.stack([v[:, h * DH:(h + 1) * DH] for h in range(NUM_HEADS)], axis=0)

        scores = jnp.einsum("hqd,hkd->hqk", qh, kh,
                            preferred_element_type=jnp.float32)        # (NH, S, S)
        scores = scores - jnp.max(scores, axis=-1, keepdims=True)
        e = jnp.exp(scores)
        probs = e * pl.reciprocal(jnp.sum(e, axis=-1, keepdims=True), approx=True)
        ctx_h = jnp.einsum("hqk,hkd->hqd", probs, vh,
                           preferred_element_type=jnp.float32)         # (NH, S, DH)
        ctx = jnp.concatenate([ctx_h[h] for h in range(NUM_HEADS)], axis=-1)  # (S, H)

        attn = jnp.dot(ctx, wo_ref[li], preferred_element_type=jnp.float32) + bo_ref[li]
        h1 = _layer_norm(x + attn, ln1_g_ref[li], ln1_b_ref[li])

        # ---- FFN ----
        ffn = jnp.dot(h1, w1_ref[li], preferred_element_type=jnp.float32) + b1_ref[li]
        # TODO(synk): HuggingFace BERT uses exact erf GELU; tanh approximation used here.
        ffn = jax.nn.gelu(ffn)
        ffn = jnp.dot(ffn, w2_ref[li], preferred_element_type=jnp.float32) + b2_ref[li]
        x = _layer_norm(h1 + ffn, ln2_g_ref[li], ln2_b_ref[li])

    # mean pool over the sequence (sublane) axis == last_hidden_state.mean(dim=1)
    o_ref[0] = jnp.mean(x, axis=0, keepdims=True)


# ----------------------------- wrapper (one pallas_call) ---------------------------
def _full_spec(shape):
    nd = len(shape)
    return pl.BlockSpec(shape, lambda b, _nd=nd: (0,) * _nd)


def text_encoder_forward(params, token_ids):
    # TODO(synk): the HuggingFace tokenizer (string -> ids) and pretrained weights have
    # no Pallas equivalent; we start from integer token ids and synthetic weights.
    # The embedding gather is data-dependent glue and stays in plain JAX; everything
    # downstream runs inside a single fused Pallas kernel.
    emb = jnp.take(params["word_emb"], token_ids.reshape(-1), axis=0)     # (B*S, H)
    type0 = params["type_emb"][0:1]                                       # token_type_ids == 0

    args = [emb.astype(jnp.float32), params["pos_emb"], type0,
            params["emb_ln_g"], params["emb_ln_b"]]
    args += [params[k] for k in WEIGHT_KEYS]

    in_specs = [pl.BlockSpec((S, H), lambda b: (b, 0))]      # per-batch (S, H) slab
    in_specs += [_full_spec(a.shape) for a in args[1:]]      # weights resident / replicated

    pooled = pl.pallas_call(
        text_encoder_kernel,
        out_shape=jax.ShapeDtypeStruct((B, 1, H), jnp.float32),
        grid=(B,),
        in_specs=in_specs,
        out_specs=pl.BlockSpec((1, 1, H), lambda b: (b, 0, 0)),
        compiler_params=pltpu.CompilerParams(
            dimension_semantics=("parallel",)),               # v7x: shard batch over 2 TCs
    )(*args)
    return pooled[:, 0, :]                                    # (B, H), free squeeze


# ----------------------------- parameter init --------------------------------------
def init_params(key):
    def normal(k, shape, std=0.02):
        return std * jax.random.normal(k, shape, dtype=jnp.float32)

    ks = jax.random.split(key, 7)
    return {
        "word_emb": normal(ks[0], (VOCAB, H)),
        "pos_emb": normal(ks[1], (S, H)),
        "type_emb": normal(ks[2], (2, H)),
        "emb_ln_g": jnp.ones((1, H), jnp.float32),
        "emb_ln_b": jnp.zeros((1, H), jnp.float32),
        # per-layer weights stacked with a leading NUM_LAYERS dim (resident in VMEM)
        "wqkv": normal(ks[3], (NUM_LAYERS, H, 3 * H)),
        "bqkv": jnp.zeros((NUM_LAYERS, 1, 3 * H), jnp.float32),
        "wo": normal(ks[4], (NUM_LAYERS, H, H)),
        "bo": jnp.zeros((NUM_LAYERS, 1, H), jnp.float32),
        "ln1_g": jnp.ones((NUM_LAYERS, 1, H), jnp.float32),
        "ln1_b": jnp.zeros((NUM_LAYERS, 1, H), jnp.float32),
        "w1": normal(ks[5], (NUM_LAYERS, H, F)),
        "b1": jnp.zeros((NUM_LAYERS, 1, F), jnp.float32),
        "w2": normal(ks[6], (NUM_LAYERS, F, H)),
        "b2": jnp.zeros((NUM_LAYERS, 1, H), jnp.float32),
        "ln2_g": jnp.ones((NUM_LAYERS, 1, H), jnp.float32),
        "ln2_b": jnp.zeros((NUM_LAYERS, 1, H), jnp.float32),
    }


# ----------------------------- pure-JAX reference ----------------------------------
def reference_forward(params, token_ids):
    emb = jnp.take(params["word_emb"], token_ids.reshape(-1), axis=0)
    x = emb + jnp.tile(params["pos_emb"], (B, 1)) + params["type_emb"][0:1]
    x = _layer_norm(x, params["emb_ln_g"], params["emb_ln_b"]).reshape(B, S, H)
    for li in range(NUM_LAYERS):
        qkv = x @ params["wqkv"][li] + params["bqkv"][li]
        q, k, v = jnp.split(qkv, 3, axis=-1)
        q = q.reshape(B, S, NUM_HEADS, DH).transpose(0, 2, 1, 3) * SCALE
        k = k.reshape(B, S, NUM_HEADS, DH).transpose(0, 2, 1, 3)
        v = v.reshape(B, S, NUM_HEADS, DH).transpose(0, 2, 1, 3)
        s = jnp.einsum("bhqd,bhkd->bhqk", q, k)
        p = jax.nn.softmax(s, axis=-1)
        ctx = jnp.einsum("bhqk,bhkd->bhqd", p, v).transpose(0, 2, 1, 3).reshape(B, S, H)
        attn = ctx @ params["wo"][li] + params["bo"][li]
        h1 = _layer_norm(x + attn, params["ln1_g"][li], params["ln1_b"][li])
        f = jax.nn.gelu(h1 @ params["w1"][li] + params["b1"][li])
        f = f @ params["w2"][li] + params["b2"][li]
        x = _layer_norm(h1 + f, params["ln2_g"][li], params["ln2_b"][li])
    return x.mean(axis=1)


if __name__ == "__main__":
    key = jax.random.PRNGKey(0)
    pkey, tkey = jax.random.split(key)
    params = init_params(pkey)
    token_ids = jax.random.randint(tkey, (B, S), 0, VOCAB, dtype=jnp.int32)

    out = text_encoder_forward(params, token_ids)
    out = jax.block_until_ready(out)
    assert out.shape == (B, H), out.shape
    assert bool(jnp.all(jnp.isfinite(out)))

    ref = reference_forward(params, token_ids)
    max_err = float(jnp.max(jnp.abs(out - ref)))
    # approx=True reciprocal in the softmax gives a small deviation; allow generous tol.
    assert max_err < 1e-2, f"mismatch vs reference: {max_err}"

    print("KERNEL_OK")
</pallas_src>

<mosaic_0001>
module attributes {stable_mosaic.version = 11 : i64} {
  func.func @text_encoder_kernel(%arg0: i32, %arg1: memref<8x32xf32, #tpu.memory_space<vmem>>, %arg2: memref<8x32xf32, #tpu.memory_space<vmem>>, %arg3: memref<1x32xf32, #tpu.memory_space<vmem>>, %arg4: memref<1x32xf32, #tpu.memory_space<vmem>>, %arg5: memref<1x32xf32, #tpu.memory_space<vmem>>, %arg6: memref<2x32x96xf32, #tpu.memory_space<vmem>>, %arg7: memref<2x1x96xf32, #tpu.memory_space<vmem>>, %arg8: memref<2x32x32xf32, #tpu.memory_space<vmem>>, %arg9: memref<2x1x32xf32, #tpu.memory_space<vmem>>, %arg10: memref<2x1x32xf32, #tpu.memory_space<vmem>>, %arg11: memref<2x1x32xf32, #tpu.memory_space<vmem>>, %arg12: memref<2x32x64xf32, #tpu.memory_space<vmem>>, %arg13: memref<2x1x64xf32, #tpu.memory_space<vmem>>, %arg14: memref<2x64x32xf32, #tpu.memory_space<vmem>>, %arg15: memref<2x1x32xf32, #tpu.memory_space<vmem>>, %arg16: memref<2x1x32xf32, #tpu.memory_space<vmem>>, %arg17: memref<2x1x32xf32, #tpu.memory_space<vmem>>, %arg18: memref<1x1x32xf32, #tpu.memory_space<vmem>>) attributes {dimension_semantics = [#tpu.dimension_semantics<parallel>], iteration_bounds = array<i64: 2>, scalar_prefetch = 0 : i64, scratch_operands = 0 : i64, tpu.core_type = #tpu.core_type<tc>, window_params = [{transform_indices = @transform_0, window_bounds = array<i64: 8, 32>}, {pipeline_mode = #tpu.pipeline_mode<synchronous>, transform_indices = @transform_1, window_bounds = array<i64: 8, 32>}, {pipeline_mode = #tpu.pipeline_mode<synchronous>, transform_indices = @transform_2, window_bounds = array<i64: 1, 32>}, {pipeline_mode = #tpu.pipeline_mode<synchronous>, transform_indices = @transform_3, window_bounds = array<i64: 1, 32>}, {pipeline_mode = #tpu.pipeline_mode<synchronous>, transform_indices = @transform_4, window_bounds = array<i64: 1, 32>}, {pipeline_mode = #tpu.pipeline_mode<synchronous>, transform_indices = @transform_5, window_bounds = array<i64: 2, 32, 96>}, {pipeline_mode = #tpu.pipeline_mode<synchronous>, transform_indices = @transform_6, window_bounds = array<i64: 2, 1, 96>}, {pipeline_mode = #tpu.pipeline_mode<synchronous>, transform_indices = @transform_7, window_bounds = array<i64: 2, 32, 32>}, {pipeline_mode = #tpu.pipeline_mode<synchronous>, transform_indices = @transform_8, window_bounds = array<i64: 2, 1, 32>}, {pipeline_mode = #tpu.pipeline_mode<synchronous>, transform_indices = @transform_9, window_bounds = array<i64: 2, 1, 32>}, {pipeline_mode = #tpu.pipeline_mode<synchronous>, transform_indices = @transform_10, window_bounds = array<i64: 2, 1, 32>}, {pipeline_mode = #tpu.pipeline_mode<synchronous>, transform_indices = @transform_11, window_bounds = array<i64: 2, 32, 64>}, {pipeline_mode = #tpu.pipeline_mode<synchronous>, transform_indices = @transform_12, window_bounds = array<i64: 2, 1, 64>}, {pipeline_mode = #tpu.pipeline_mode<synchronous>, transform_indices = @transform_13, window_bounds = array<i64: 2, 64, 32>}, {pipeline_mode = #tpu.pipeline_mode<synchronous>, transform_indices = @transform_14, window_bounds = array<i64: 2, 1, 32>}, {pipeline_mode = #tpu.pipeline_mode<synchronous>, transform_indices = @transform_15, window_bounds = array<i64: 2, 1, 32>}, {pipeline_mode = #tpu.pipeline_mode<synchronous>, transform_indices = @transform_16, window_bounds = array<i64: 2, 1, 32>}, {transform_indices = @transform_17, window_bounds = array<i64: 1, 1, 32>}]} {
    %c0 = arith.constant 0 : index
    %c0_0 = arith.constant 0 : index
    %0 = vector.load %arg1[%c0, %c0_0] : memref<8x32xf32, #tpu.memory_space<vmem>>, vector<8x32xf32>
    %c0_1 = arith.constant 0 : index
    %c0_2 = arith.constant 0 : index
    %1 = vector.load %arg2[%c0_1, %c0_2] : memref<8x32xf32, #tpu.memory_space<vmem>>, vector<8x32xf32>
    %2 = arith.addf %0, %1 : vector<8x32xf32>
    %c0_3 = arith.constant 0 : index
    %c0_4 = arith.constant 0 : index
    %3 = vector.load %arg3[%c0_3, %c0_4] : memref<1x32xf32, #tpu.memory_space<vmem>>, vector<1x32xf32>
    %4 = vector.broadcast %3 : vector<1x32xf32> to vector<8x32xf32>
    %5 = arith.addf %2, %4 : vector<8x32xf32>
    %c0_5 = arith.constant 0 : index
    %c0_6 = arith.constant 0 : index
    %6 = vector.load %arg4[%c0_5, %c0_6] : memref<1x32xf32, #tpu.memory_space<vmem>>, vector<1x32xf32>
    %c0_7 = arith.constant 0 : index
    %c0_8 = arith.constant 0 : index
    %7 = vector.load %arg5[%c0_7, %c0_8] : memref<1x32xf32, #tpu.memory_space<vmem>>, vector<1x32xf32>
    %cst = arith.constant dense<0.000000e+00> : vector<8xf32>
    %8 = vector.multi_reduction <add>, %5, %cst [1] : vector<8x32xf32> to vector<8xf32>
    %9 = vector.shape_cast %8 : vector<8xf32> to vector<8x1xf32>
    %cst_9 = arith.constant 3.200000e+01 : f32
    %10 = vector.broadcast %cst_9 : f32 to vector<8x1xf32>
    %11 = arith.divf %9, %10 : vector<8x1xf32>
    %12 = vector.broadcast %11 : vector<8x1xf32> to vector<8x32xf32>
    %13 = arith.subf %5, %12 : vector<8x32xf32>
    %14 = arith.mulf %13, %13 : vector<8x32xf32>
    %cst_10 = arith.constant dense<0.000000e+00> : vector<8xf32>
    %15 = vector.multi_reduction <add>, %14, %cst_10 [1] : vector<8x32xf32> to vector<8xf32>
    %16 = vector.shape_cast %15 : vector<8xf32> to vector<8x1xf32>
    %cst_11 = arith.constant 3.200000e+01 : f32
    %17 = vector.broadcast %cst_11 : f32 to vector<8x1xf32>
    %18 = arith.divf %16, %17 : vector<8x1xf32>
    %cst_12 = arith.constant 9.99999996E-13 : f32
    %19 = vector.broadcast %cst_12 : f32 to vector<8x1xf32>
    %20 = arith.addf %18, %19 : vector<8x1xf32>
    %21 = math.rsqrt %20 : vector<8x1xf32>
    %22 = vector.broadcast %11 : vector<8x1xf32> to vector<8x32xf32>
    %23 = arith.subf %5, %22 : vector<8x32xf32>
    %24 = vector.broadcast %21 : vector<8x1xf32> to vector<8x32xf32>
    %25 = arith.mulf %23, %24 : vector<8x32xf32>
    %26 = vector.broadcast %6 : vector<1x32xf32> to vector<8x32xf32>
    %27 = arith.mulf %25, %26 : vector<8x32xf32>
    %28 = vector.broadcast %7 : vector<1x32xf32> to vector<8x32xf32>
    %29 = arith.addf %27, %28 : vector<8x32xf32>
    %c0_13 = arith.constant 0 : index
    %c0_14 = arith.constant 0 : index
    %c0_15 = arith.constant 0 : index
    %30 = vector.load %arg6[%c0_13, %c0_14, %c0_15] : memref<2x32x96xf32, #tpu.memory_space<vmem>>, vector<1x32x96xf32>
    %31 = vector.shape_cast %30 : vector<1x32x96xf32> to vector<32x96xf32>
    %cst_16 = arith.constant dense<0.000000e+00> : vector<8x96xf32>
    %32 = tpu.matmul %29, %31, %cst_16 {dimension_numbers = #tpu.dot_dimension_numbers<[1], [0], [0], [1], [0, 0, 1, 1], [], []>} : vector<8x32xf32>, vector<32x96xf32>, vector<8x96xf32> -> vector<8x96xf32>
    %c0_17 = arith.constant 0 : index
    %c0_18 = arith.constant 0 : index
    %c0_19 = arith.constant 0 : index
    %33 = vector.load %arg7[%c0_17, %c0_18, %c0_19] : memref<2x1x96xf32, #tpu.memory_space<vmem>>, vector<1x1x96xf32>
    %34 = vector.shape_cast %33 : vector<1x1x96xf32> to vector<1x96xf32>
    %35 = vector.broadcast %34 : vector<1x96xf32> to vector<8x96xf32>
    %36 = arith.addf %32, %35 : vector<8x96xf32>
    %37 = vector.extract_strided_slice %36 {offsets = [0, 0], sizes = [8, 32], strides = [1, 1]} : vector<8x96xf32> to vector<8x32xf32>
    %cst_20 = arith.constant 0.353553385 : f32
    %38 = vector.broadcast %cst_20 : f32 to vector<8x32xf32>
    %39 = arith.mulf %37, %38 : vector<8x32xf32>
    %40 = vector.extract_strided_slice %36 {offsets = [0, 32], sizes = [8, 32], strides = [1, 1]} : vector<8x96xf32> to vector<8x32xf32>
    %41 = vector.extract_strided_slice %36 {offsets = [0, 64], sizes = [8, 32], strides = [1, 1]} : vector<8x96xf32> to vector<8x32xf32>
    %42 = vector.extract_strided_slice %39 {offsets = [0, 0], sizes = [8, 8], strides = [1, 1]} : vector<8x32xf32> to vector<8x8xf32>
    %43 = vector.extract_strided_slice %39 {offsets = [0, 8], sizes = [8, 8], strides = [1, 1]} : vector<8x32xf32> to vector<8x8xf32>
    %44 = vector.extract_strided_slice %39 {offsets = [0, 16], sizes = [8, 8], strides = [1, 1]} : vector<8x32xf32> to vector<8x8xf32>
    %45 = vector.extract_strided_slice %39 {offsets = [0, 24], sizes = [8, 8], strides = [1, 1]} : vector<8x32xf32> to vector<8x8xf32>
    %46 = vector.shape_cast %42 : vector<8x8xf32> to vector<1x8x8xf32>
    %47 = vector.shape_cast %43 : vector<8x8xf32> to vector<1x8x8xf32>
    %48 = vector.shape_cast %44 : vector<8x8xf32> to vector<1x8x8xf32>
    %49 = vector.shape_cast %45 : vector<8x8xf32> to vector<1x8x8xf32>
    %50 = tpu.concatenate %46, %47, %48, %49 in 0 : vector<1x8x8xf32>, vector<1x8x8xf32>, vector<1x8x8xf32>, vector<1x8x8xf32> -> vector<4x8x8xf32>
    %51 = vector.extract_strided_slice %40 {offsets = [0, 0], sizes = [8, 8], strides = [1, 1]} : vector<8x32xf32> to vector<8x8xf32>
    %52 = vector.extract_strided_slice %40 {offsets = [0, 8], sizes = [8, 8], strides = [1, 1]} : vector<8x32xf32> to vector<8x8xf32>
    %53 = vector.extract_strided_slice %40 {offsets = [0, 16], sizes = [8, 8], strides = [1, 1]} : vector<8x32xf32> to vector<8x8xf32>
    %54 = vector.extract_strided_slice %40 {offsets = [0, 24], sizes = [8, 8], strides = [1, 1]} : vector<8x32xf32> to vector<8x8xf32>
    %55 = vector.shape_cast %51 : vector<8x8xf32> to vector<1x8x8xf32>
    %56 = vector.shape_cast %52 : vector<8x8xf32> to vector<1x8x8xf32>
    %57 = vector.shape_cast %53 : vector<8x8xf32> to vector<1x8x8xf32>
    %58 = vector.shape_cast %54 : vector<8x8xf32> to vector<1x8x8xf32>
    %59 = tpu.concatenate %55, %56, %57, %58 in 0 : vector<1x8x8xf32>, vector<1x8x8xf32>, vector<1x8x8xf32>, vector<1x8x8xf32> -> vector<4x8x8xf32>
    %60 = vector.extract_strided_slice %41 {offsets = [0, 0], sizes = [8, 8], strides = [1, 1]} : vector<8x32xf32> to vector<8x8xf32>
    %61 = vector.extract_strided_slice %41 {offsets = [0, 8], sizes = [8, 8], strides = [1, 1]} : vector<8x32xf32> to vector<8x8xf32>
    %62 = vector.extract_strided_slice %41 {offsets = [0, 16], sizes = [8, 8], strides = [1, 1]} : vector<8x32xf32> to vector<8x8xf32>
    %63 = vector.extract_strided_slice %41 {offsets = [0, 24], sizes = [8, 8], strides = [1, 1]} : vector<8x32xf32> to vector<8x8xf32>
    %64 = vector.shape_cast %60 : vector<8x8xf32> to vector<1x8x8xf32>
    %65 = vector.shape_cast %61 : vector<8x8xf32> to vector<1x8x8xf32>
    %66 = vector.shape_cast %62 : vector<8x8xf32> to vector<1x8x8xf32>
    %67 = vector.shape_cast %63 : vector<8x8xf32> to vector<1x8x8xf32>
    %68 = tpu.concatenate %64, %65, %66, %67 in 0 : vector<1x8x8xf32>, vector<1x8x8xf32>, vector<1x8x8xf32>, vector<1x8x8xf32> -> vector<4x8x8xf32>
    "tpu.trace_start"() <{level = 10 : i32, message = "hqd,hkd->hqk"}> : () -> ()
    %cst_21 = arith.constant dense<0.000000e+00> : vector<4x8x8xf32>
    %69 = tpu.matmul %50, %59, %cst_21 {dimension_numbers = #tpu.dot_dimension_numbers<[2], [2], [1], [1], [0, 0, 0, 1, 1, 1], [0], [0]>} : vector<4x8x8xf32>, vector<4x8x8xf32>, vector<4x8x8xf32> -> vector<4x8x8xf32>
    "tpu.trace_stop"() : () -> ()
    %cst_22 = arith.constant dense<0xFF800000> : vector<4x8xf32>
    %70 = vector.multi_reduction <maximumf>, %69, %cst_22 [2] : vector<4x8x8xf32> to vector<4x8xf32>
    %71 = vector.shape_cast %70 : vector<4x8xf32> to vector<4x8x1xf32>
    %72 = vector.broadcast %71 : vector<4x8x1xf32> to vector<4x8x8xf32>
    %73 = arith.subf %69, %72 : vector<4x8x8xf32>
    %74 = math.exp %73 : vector<4x8x8xf32>
    %cst_23 = arith.constant dense<0.000000e+00> : vector<4x8xf32>
    %75 = vector.multi_reduction <add>, %74, %cst_23 [2] : vector<4x8x8xf32> to vector<4x8xf32>
    %76 = vector.shape_cast %75 : vector<4x8xf32> to vector<4x8x1xf32>
    %77 = tpu.reciprocal %76 {approx = true} : vector<4x8x1xf32> -> vector<4x8x1xf32>
    %78 = vector.broadcast %77 : vector<4x8x1xf32> to vector<4x8x8xf32>
    %79 = arith.mulf %74, %78 : vector<4x8x8xf32>
    "tpu.trace_start"() <{level = 10 : i32, message = "hqk,hkd->hqd"}> : () -> ()
    %cst_24 = arith.constant dense<0.000000e+00> : vector<4x8x8xf32>
    %80 = tpu.matmul %79, %68, %cst_24 {dimension_numbers = #tpu.dot_dimension_numbers<[2], [1], [1], [2], [0, 0, 0, 1, 1, 2], [0], [0]>} : vector<4x8x8xf32>, vector<4x8x8xf32>, vector<4x8x8xf32> -> vector<4x8x8xf32>
    "tpu.trace_stop"() : () -> ()
    %81 = vector.extract_strided_slice %80 {offsets = [0, 0, 0], sizes = [1, 8, 8], strides = [1, 1, 1]} : vector<4x8x8xf32> to vector<1x8x8xf32>
    %82 = vector.shape_cast %81 : vector<1x8x8xf32> to vector<8x8xf32>
    %83 = vector.extract_strided_slice %80 {offsets = [1, 0, 0], sizes = [1, 8, 8], strides = [1, 1, 1]} : vector<4x8x8xf32> to vector<1x8x8xf32>
    %84 = vector.shape_cast %83 : vector<1x8x8xf32> to vector<8x8xf32>
    %85 = vector.extract_strided_slice %80 {offsets = [2, 0, 0], sizes = [1, 8, 8], strides = [1, 1, 1]} : vector<4x8x8xf32> to vector<1x8x8xf32>
    %86 = vector.shape_cast %85 : vector<1x8x8xf32> to vector<8x8xf32>
    %87 = vector.extract_strided_slice %80 {offsets = [3, 0, 0], sizes = [1, 8, 8], strides = [1, 1, 1]} : vector<4x8x8xf32> to vector<1x8x8xf32>
    %88 = vector.shape_cast %87 : vector<1x8x8xf32> to vector<8x8xf32>
    %89 = tpu.concatenate %82, %84, %86, %88 in 1 : vector<8x8xf32>, vector<8x8xf32>, vector<8x8xf32>, vector<8x8xf32> -> vector<8x32xf32>
    %c0_25 = arith.constant 0 : index
    %c0_26 = arith.constant 0 : index
    %c0_27 = arith.constant 0 : index
    %90 = vector.load %arg8[%c0_25, %c0_26, %c0_27] : memref<2x32x32xf32, #tpu.memory_space<vmem>>, vector<1x32x32xf32>
    %91 = vector.shape_cast %90 : vector<1x32x32xf32> to vector<32x32xf32>
    %cst_28 = arith.constant dense<0.000000e+00> : vector<8x32xf32>
    %92 = tpu.matmul %89, %91, %cst_28 {dimension_numbers = #tpu.dot_dimension_numbers<[1], [0], [0], [1], [0, 0, 1, 1], [], []>} : vector<8x32xf32>, vector<32x32xf32>, vector<8x32xf32> -> vector<8x32xf32>
    %c0_29 = arith.constant 0 : index
    %c0_30 = arith.constant 0 : index
    %c0_31 = arith.constant 0 : index
    %93 = vector.load %arg9[%c0_29, %c0_30, %c0_31] : memref<2x1x32xf32, #tpu.memory_space<vmem>>, vector<1x1x32xf32>
    %94 = vector.shape_cast %93 : vector<1x1x32xf32> to vector<1x32xf32>
    %95 = vector.broadcast %94 : vector<1x32xf32> to vector<8x32xf32>
    %96 = arith.addf %92, %95 : vector<8x32xf32>
    %97 = arith.addf %29, %96 : vector<8x32xf32>
    %c0_32 = arith.constant 0 : index
    %c0_33 = arith.constant 0 : index
    %c0_34 = arith.constant 0 : index
    %98 = vector.load %arg10[%c0_32, %c0_33, %c0_34] : memref<2x1x32xf32, #tpu.memory_space<vmem>>, vector<1x1x32xf32>
    %99 = vector.shape_cast %98 : vector<1x1x32xf32> to vector<1x32xf32>
    %c0_35 = arith.constant 0 : index
    %c0_36 = arith.constant 0 : index
    %c0_37 = arith.constant 0 : index
    %100 = vector.load %arg11[%c0_35, %c0_36, %c0_37] : memref<2x1x32xf32, #tpu.memory_space<vmem>>, vector<1x1x32xf32>
    %101 = vector.shape_cast %100 : vector<1x1x32xf32> to vector<1x32xf32>
    %cst_38 = arith.constant dense<0.000000e+00> : vector<8xf32>
    %102 = vector.multi_reduction <add>, %97, %cst_38 [1] : vector<8x32xf32> to vector<8xf32>
    %103 = vector.shape_cast %102 : vector<8xf32> to vector<8x1xf32>
    %cst_39 = arith.constant 3.200000e+01 : f32
    %104 = vector.broadcast %cst_39 : f32 to vector<8x1xf32>
    %105 = arith.divf %103, %104 : vector<8x1xf32>
    %106 = vector.broadcast %105 : vector<8x1xf32> to vector<8x32xf32>
    %107 = arith.subf %97, %106 : vector<8x32xf32>
    %108 = arith.mulf %107, %107 : vector<8x32xf32>
    %cst_40 = arith.constant dense<0.000000e+00> : vector<8xf32>
    %109 = vector.multi_reduction <add>, %108, %cst_40 [1] : vector<8x32xf32> to vector<8xf32>
    %110 = vector.shape_cast %109 : vector<8xf32> to vector<8x1xf32>
    %cst_41 = arith.constant 3.200000e+01 : f32
    %111 = vector.broadcast %cst_41 : f32 to vector<8x1xf32>
    %112 = arith.divf %110, %111 : vector<8x1xf32>
    %cst_42 = arith.constant 9.99999996E-13 : f32
    %113 = vector.broadcast %cst_42 : f32 to vector<8x1xf32>
    %114 = arith.addf %112, %113 : vector<8x1xf32>
    %115 = math.rsqrt %114 : vector<8x1xf32>
    %116 = vector.broadcast %105 : vector<8x1xf32> to vector<8x32xf32>
    %117 = arith.subf %97, %116 : vector<8x32xf32>
    %118 = vector.broadcast %115 : vector<8x1xf32> to vector<8x32xf32>
    %119 = arith.mulf %117, %118 : vector<8x32xf32>
    %120 = vector.broadcast %99 : vector<1x32xf32> to vector<8x32xf32>
    %121 = arith.mulf %119, %120 : vector<8x32xf32>
    %122 = vector.broadcast %101 : vector<1x32xf32> to vector<8x32xf32>
    %123 = arith.addf %121, %122 : vector<8x32xf32>
    %c0_43 = arith.constant 0 : index
    %c0_44 = arith.constant 0 : index
    %c0_45 = arith.constant 0 : index
    %124 = vector.load %arg12[%c0_43, %c0_44, %c0_45] : memref<2x32x64xf32, #tpu.memory_space<vmem>>, vector<1x32x64xf32>
    %125 = vector.shape_cast %124 : vector<1x32x64xf32> to vector<32x64xf32>
    %cst_46 = arith.constant dense<0.000000e+00> : vector<8x64xf32>
    %126 = tpu.matmul %123, %125, %cst_46 {dimension_numbers = #tpu.dot_dimension_numbers<[1], [0], [0], [1], [0, 0, 1, 1], [], []>} : vector<8x32xf32>, vector<32x64xf32>, vector<8x64xf32> -> vector<8x64xf32>
    %c0_47 = arith.constant 0 : index
    %c0_48 = arith.constant 0 : index
    %c0_49 = arith.constant 0 : index
    %127 = vector.load %arg13[%c0_47, %c0_48, %c0_49] : memref<2x1x64xf32, #tpu.memory_space<vmem>>, vector<1x1x64xf32>
    %128 = vector.shape_cast %127 : vector<1x1x64xf32> to vector<1x64xf32>
    %129 = vector.broadcast %128 : vector<1x64xf32> to vector<8x64xf32>
    %130 = arith.addf %126, %129 : vector<8x64xf32>
    %131 = arith.mulf %130, %130 : vector<8x64xf32>
    %132 = arith.mulf %130, %131 : vector<8x64xf32>
    %cst_50 = arith.constant 4.471500e-02 : f32
    %133 = vector.broadcast %cst_50 : f32 to vector<8x64xf32>
    %134 = arith.mulf %133, %132 : vector<8x64xf32>
    %135 = arith.addf %130, %134 : vector<8x64xf32>
    %cst_51 = arith.constant 0.797884583 : f32
    %136 = vector.broadcast %cst_51 : f32 to vector<8x64xf32>
    %137 = arith.mulf %136, %135 : vector<8x64xf32>
    %138 = math.tanh %137 : vector<8x64xf32>
    %cst_52 = arith.constant 1.000000e+00 : f32
    %139 = vector.broadcast %cst_52 : f32 to vector<8x64xf32>
    %140 = arith.addf %139, %138 : vector<8x64xf32>
    %cst_53 = arith.constant 5.000000e-01 : f32
    %141 = vector.broadcast %cst_53 : f32 to vector<8x64xf32>
    %142 = arith.mulf %141, %140 : vector<8x64xf32>
    %143 = arith.mulf %130, %142 : vector<8x64xf32>
    %c0_54 = arith.constant 0 : index
    %c0_55 = arith.constant 0 : index
    %c0_56 = arith.constant 0 : index
    %144 = vector.load %arg14[%c0_54, %c0_55, %c0_56] : memref<2x64x32xf32, #tpu.memory_space<vmem>>, vector<1x64x32xf32>
    %145 = vector.shape_cast %144 : vector<1x64x32xf32> to vector<64x32xf32>
    %cst_57 = arith.constant dense<0.000000e+00> : vector<8x32xf32>
    %146 = tpu.matmul %143, %145, %cst_57 {dimension_numbers = #tpu.dot_dimension_numbers<[1], [0], [0], [1], [0, 0, 1, 1], [], []>} : vector<8x64xf32>, vector<64x32xf32>, vector<8x32xf32> -> vector<8x32xf32>
    %c0_58 = arith.constant 0 : index
    %c0_59 = arith.constant 0 : index
    %c0_60 = arith.constant 0 : index
    %147 = vector.load %arg15[%c0_58, %c0_59, %c0_60] : memref<2x1x32xf32, #tpu.memory_space<vmem>>, vector<1x1x32xf32>
    %148 = vector.shape_cast %147 : vector<1x1x32xf32> to vector<1x32xf32>
    %149 = vector.broadcast %148 : vector<1x32xf32> to vector<8x32xf32>
    %150 = arith.addf %146, %149 : vector<8x32xf32>
    %151 = arith.addf %123, %150 : vector<8x32xf32>
    %c0_61 = arith.constant 0 : index
    %c0_62 = arith.constant 0 : index
    %c0_63 = arith.constant 0 : index
    %152 = vector.load %arg16[%c0_61, %c0_62, %c0_63] : memref<2x1x32xf32, #tpu.memory_space<vmem>>, vector<1x1x32xf32>
    %153 = vector.shape_cast %152 : vector<1x1x32xf32> to vector<1x32xf32>
    %c0_64 = arith.constant 0 : index
    %c0_65 = arith.constant 0 : index
    %c0_66 = arith.constant 0 : index
    %154 = vector.load %arg17[%c0_64, %c0_65, %c0_66] : memref<2x1x32xf32, #tpu.memory_space<vmem>>, vector<1x1x32xf32>
    %155 = vector.shape_cast %154 : vector<1x1x32xf32> to vector<1x32xf32>
    %cst_67 = arith.constant dense<0.000000e+00> : vector<8xf32>
    %156 = vector.multi_reduction <add>, %151, %cst_67 [1] : vector<8x32xf32> to vector<8xf32>
    %157 = vector.shape_cast %156 : vector<8xf32> to vector<8x1xf32>
    %cst_68 = arith.constant 3.200000e+01 : f32
    %158 = vector.broadcast %cst_68 : f32 to vector<8x1xf32>
    %159 = arith.divf %157, %158 : vector<8x1xf32>
    %160 = vector.broadcast %159 : vector<8x1xf32> to vector<8x32xf32>
    %161 = arith.subf %151, %160 : vector<8x32xf32>
    %162 = arith.mulf %161, %161 : vector<8x32xf32>
    %cst_69 = arith.constant dense<0.000000e+00> : vector<8xf32>
    %163 = vector.multi_reduction <add>, %162, %cst_69 [1] : vector<8x32xf32> to vector<8xf32>
    %164 = vector.shape_cast %163 : vector<8xf32> to vector<8x1xf32>
    %cst_70 = arith.constant 3.200000e+01 : f32
    %165 = vector.broadcast %cst_70 : f32 to vector<8x1xf32>
    %166 = arith.divf %164, %165 : vector<8x1xf32>
    %cst_71 = arith.constant 9.99999996E-13 : f32
    %167 = vector.broadcast %cst_71 : f32 to vector<8x1xf32>
    %168 = arith.addf %166, %167 : vector<8x1xf32>
    %169 = math.rsqrt %168 : vector<8x1xf32>
    %170 = vector.broadcast %159 : vector<8x1xf32> to vector<8x32xf32>
    %171 = arith.subf %151, %170 : vector<8x32xf32>
    %172 = vector.broadcast %169 : vector<8x1xf32> to vector<8x32xf32>
    %173 = arith.mulf %171, %172 : vector<8x32xf32>
    %174 = vector.broadcast %153 : vector<1x32xf32> to vector<8x32xf32>
    %175 = arith.mulf %173, %174 : vector<8x32xf32>
    %176 = vector.broadcast %155 : vector<1x32xf32> to vector<8x32xf32>
    %177 = arith.addf %175, %176 : vector<8x32xf32>
    %c1 = arith.constant 1 : index
    %c0_72 = arith.constant 0 : index
    %c0_73 = arith.constant 0 : index
    %178 = vector.load %arg6[%c1, %c0_72, %c0_73] : memref<2x32x96xf32, #tpu.memory_space<vmem>>, vector<1x32x96xf32>
    %179 = vector.shape_cast %178 : vector<1x32x96xf32> to vector<32x96xf32>
    %cst_74 = arith.constant dense<0.000000e+00> : vector<8x96xf32>
    %180 = tpu.matmul %177, %179, %cst_74 {dimension_numbers = #tpu.dot_dimension_numbers<[1], [0], [0], [1], [0, 0, 1, 1], [], []>} : vector<8x32xf32>, vector<32x96xf32>, vector<8x96xf32> -> vector<8x96xf32>
    %c1_75 = arith.constant 1 : index
    %c0_76 = arith.constant 0 : index
    %c0_77 = arith.constant 0 : index
    %181 = vector.load %arg7[%c1_75, %c0_76, %c0_77] : memref<2x1x96xf32, #tpu.memory_space<vmem>>, vector<1x1x96xf32>
    %182 = vector.shape_cast %181 : vector<1x1x96xf32> to vector<1x96xf32>
    %183 = vector.broadcast %182 : vector<1x96xf32> to vector<8x96xf32>
    %184 = arith.addf %180, %183 : vector<8x96xf32>
    %185 = vector.extract_strided_slice %184 {offsets = [0, 0], sizes = [8, 32], strides = [1, 1]} : vector<8x96xf32> to vector<8x32xf32>
    %cst_78 = arith.constant 0.353553385 : f32
    %186 = vector.broadcast %cst_78 : f32 to vector<8x32xf32>
    %187 = arith.mulf %185, %186 : vector<8x32xf32>
    %188 = vector.extract_strided_slice %184 {offsets = [0, 32], sizes = [8, 32], strides = [1, 1]} : vector<8x96xf32> to vector<8x32xf32>
    %189 = vector.extract_strided_slice %184 {offsets = [0, 64], sizes = [8, 32], strides = [1, 1]} : vector<8x96xf32> to vector<8x32xf32>
    %190 = vector.extract_strided_slice %187 {offsets = [0, 0], sizes = [8, 8], strides = [1, 1]} : vector<8x32xf32> to vector<8x8xf32>
    %191 = vector.extract_strided_slice %187 {offsets = [0, 8], sizes = [8, 8], strides = [1, 1]} : vector<8x32xf32> to vector<8x8xf32>
    %192 = vector.extract_strided_slice %187 {offsets = [0, 16], sizes = [8, 8], strides = [1, 1]} : vector<8x32xf32> to vector<8x8xf32>
    %193 = vector.extract_strided_slice %187 {offsets = [0, 24], sizes = [8, 8], strides = [1, 1]} : vector<8x32xf32> to vector<8x8xf32>
    %194 = vector.shape_cast %190 : vector<8x8xf32> to vector<1x8x8xf32>
    %195 = vector.shape_cast %191 : vector<8x8xf32> to vector<1x8x8xf32>
    %196 = vector.shape_cast %192 : vector<8x8xf32> to vector<1x8x8xf32>
    %197 = vector.shape_cast %193 : vector<8x8xf32> to vector<1x8x8xf32>
    %198 = tpu.concatenate %194, %195, %196, %197 in 0 : vector<1x8x8xf32>, vector<1x8x8xf32>, vector<1x8x8xf32>, vector<1x8x8xf32> -> vector<4x8x8xf32>
    %199 = vector.extract_strided_slice %188 {offsets = [0, 0], sizes = [8, 8], strides = [1, 1]} : vector<8x32xf32> to vector<8x8xf32>
    %200 = vector.extract_strided_slice %188 {offsets = [0, 8], sizes = [8, 8], strides = [1, 1]} : vector<8x32xf32> to vector<8x8xf32>
    %201 = vector.extract_strided_slice %188 {offsets = [0, 16], sizes = [8, 8], strides = [1, 1]} : vector<8x32xf32> to vector<8x8xf32>
    %202 = vector.extract_strided_slice %188 {offsets = [0, 24], sizes = [8, 8], strides = [1, 1]} : vector<8x32xf32> to vector<8x8xf32>
    %203 = vector.shape_cast %199 : vector<8x8xf32> to vector<1x8x8xf32>
    %204 = vector.shape_cast %200 : vector<8x8xf32> to vector<1x8x8xf32>
    %205 = vector.shape_cast %201 : vector<8x8xf32> to vector<1x8x8xf32>
    %206 = vector.shape_cast %202 : vector<8x8xf32> to vector<1x8x8xf32>
    %207 = tpu.concatenate %203, %204, %205, %206 in 0 : vector<1x8x8xf32>, vector<1x8x8xf32>, vector<1x8x8xf32>, vector<1x8x8xf32> -> vector<4x8x8xf32>
    %208 = vector.extract_strided_slice %189 {offsets = [0, 0], sizes = [8, 8], strides = [1, 1]} : vector<8x32xf32> to vector<8x8xf32>
    %209 = vector.extract_strided_slice %189 {offsets = [0, 8], sizes = [8, 8], strides = [1, 1]} : vector<8x32xf32> to vector<8x8xf32>
    %210 = vector.extract_strided_slice %189 {offsets = [0, 16], sizes = [8, 8], strides = [1, 1]} : vector<8x32xf32> to vector<8x8xf32>
    %211 = vector.extract_strided_slice %189 {offsets = [0, 24], sizes = [8, 8], strides = [1, 1]} : vector<8x32xf32> to vector<8x8xf32>
    %212 = vector.shape_cast %208 : vector<8x8xf32> to vector<1x8x8xf32>
    %213 = vector.shape_cast %209 : vector<8x8xf32> to vector<1x8x8xf32>
    %214 = vector.shape_cast %210 : vector<8x8xf32> to vector<1x8x8xf32>
    %215 = vector.shape_cast %211 : vector<8x8xf32> to vector<1x8x8xf32>
    %216 = tpu.concatenate %212, %213, %214, %215 in 0 : vector<1x8x8xf32>, vector<1x8x8xf32>, vector<1x8x8xf32>, vector<1x8x8xf32> -> vector<4x8x8xf32>
    "tpu.trace_start"() <{level = 10 : i32, message = "hqd,hkd->hqk"}> : () -> ()
    %cst_79 = arith.constant dense<0.000000e+00> : vector<4x8x8xf32>
    %217 = tpu.matmul %198, %207, %cst_79 {dimension_numbers = #tpu.dot_dimension_numbers<[2], [2], [1], [1], [0, 0, 0, 1, 1, 1], [0], [0]>} : vector<4x8x8xf32>, vector<4x8x8xf32>, vector<4x8x8xf32> -> vector<4x8x8xf32>
    "tpu.trace_stop"() : () -> ()
    %cst_80 = arith.constant dense<0xFF800000> : vector<4x8xf32>
    %218 = vector.multi_reduction <maximumf>, %217, %cst_80 [2] : vector<4x8x8xf32> to vector<4x8xf32>
    %219 = vector.shape_cast %218 : vector<4x8xf32> to vector<4x8x1xf32>
    %220 = vector.broadcast %219 : vector<4x8x1xf32> to vector<4x8x8xf32>
    %221 = arith.subf %217, %220 : vector<4x8x8xf32>
    %222 = math.exp %221 : vector<4x8x8xf32>
    %cst_81 = arith.constant dense<0.000000e+00> : vector<4x8xf32>
    %223 = vector.multi_reduction <add>, %222, %cst_81 [2] : vector<4x8x8xf32> to vector<4x8xf32>
    %224 = vector.shape_cast %223 : vector<4x8xf32> to vector<4x8x1xf32>
    %225 = tpu.reciprocal %224 {approx = true} : vector<4x8x1xf32> -> vector<4x8x1xf32>
    %226 = vector.broadcast %225 : vector<4x8x1xf32> to vector<4x8x8xf32>
    %227 = arith.mulf %222, %226 : vector<4x8x8xf32>
    "tpu.trace_start"() <{level = 10 : i32, message = "hqk,hkd->hqd"}> : () -> ()
    %cst_82 = arith.constant dense<0.000000e+00> : vector<4x8x8xf32>
    %228 = tpu.matmul %227, %216, %cst_82 {dimension_numbers = #tpu.dot_dimension_numbers<[2], [1], [1], [2], [0, 0, 0, 1, 1, 2], [0], [0]>} : vector<4x8x8xf32>, vector<4x8x8xf32>, vector<4x8x8xf32> -> vector<4x8x8xf32>
    "tpu.trace_stop"() : () -> ()
    %229 = vector.extract_strided_slice %228 {offsets = [0, 0, 0], sizes = [1, 8, 8], strides = [1, 1, 1]} : vector<4x8x8xf32> to vector<1x8x8xf32>
    %230 = vector.shape_cast %229 : vector<1x8x8xf32> to vector<8x8xf32>
    %231 = vector.extract_strided_slice %228 {offsets = [1, 0, 0], sizes = [1, 8, 8], strides = [1, 1, 1]} : vector<4x8x8xf32> to vector<1x8x8xf32>
    %232 = vector.shape_cast %231 : vector<1x8x8xf32> to vector<8x8xf32>
    %233 = vector.extract_strided_slice %228 {offsets = [2, 0, 0], sizes = [1, 8, 8], strides = [1, 1, 1]} : vector<4x8x8xf32> to vector<1x8x8xf32>
    %234 = vector.shape_cast %233 : vector<1x8x8xf32> to vector<8x8xf32>
    %235 = vector.extract_strided_slice %228 {offsets = [3, 0, 0], sizes = [1, 8, 8], strides = [1, 1, 1]} : vector<4x8x8xf32> to vector<1x8x8xf32>
    %236 = vector.shape_cast %235 : vector<1x8x8xf32> to vector<8x8xf32>
    %237 = tpu.concatenate %230, %232, %234, %236 in 1 : vector<8x8xf32>, vector<8x8xf32>, vector<8x8xf32>, vector<8x8xf32> -> vector<8x32xf32>
    %c1_83 = arith.constant 1 : index
    %c0_84 = arith.constant 0 : index
    %c0_85 = arith.constant 0 : index
    %238 = vector.load %arg8[%c1_83, %c0_84, %c0_85] : memref<2x32x32xf32, #tpu.memory_space<vmem>>, vector<1x32x32xf32>
    %239 = vector.shape_cast %238 : vector<1x32x32xf32> to vector<32x32xf32>
    %cst_86 = arith.constant dense<0.000000e+00> : vector<8x32xf32>
    %240 = tpu.matmul %237, %239, %cst_86 {dimension_numbers = #tpu.dot_dimension_numbers<[1], [0], [0], [1], [0, 0, 1, 1], [], []>} : vector<8x32xf32>, vector<32x32xf32>, vector<8x32xf32> -> vector<8x32xf32>
    %c1_87 = arith.constant 1 : index
    %c0_88 = arith.constant 0 : index
    %c0_89 = arith.constant 0 : index
    %241 = vector.load %arg9[%c1_87, %c0_88, %c0_89] : memref<2x1x32xf32, #tpu.memory_space<vmem>>, vector<1x1x32xf32>
    %242 = vector.shape_cast %241 : vector<1x1x32xf32> to vector<1x32xf32>
    %243 = vector.broadcast %242 : vector<1x32xf32> to vector<8x32xf32>
    %244 = arith.addf %240, %243 : vector<8x32xf32>
    %245 = arith.addf %177, %244 : vector<8x32xf32>
    %c1_90 = arith.constant 1 : index
    %c0_91 = arith.constant 0 : index
    %c0_92 = arith.constant 0 : index
    %246 = vector.load %arg10[%c1_90, %c0_91, %c0_92] : memref<2x1x32xf32, #tpu.memory_space<vmem>>, vector<1x1x32xf32>
    %247 = vector.shape_cast %246 : vector<1x1x32xf32> to vector<1x32xf32>
    %c1_93 = arith.constant 1 : index
    %c0_94 = arith.constant 0 : index
    %c0_95 = arith.constant 0 : index
    %248 = vector.load %arg11[%c1_93, %c0_94, %c0_95] : memref<2x1x32xf32, #tpu.memory_space<vmem>>, vector<1x1x32xf32>
    %249 = vector.shape_cast %248 : vector<1x1x32xf32> to vector<1x32xf32>
    %cst_96 = arith.constant dense<0.000000e+00> : vector<8xf32>
    %250 = vector.multi_reduction <add>, %245, %cst_96 [1] : vector<8x32xf32> to vector<8xf32>
    %251 = vector.shape_cast %250 : vector<8xf32> to vector<8x1xf32>
    %cst_97 = arith.constant 3.200000e+01 : f32
    %252 = vector.broadcast %cst_97 : f32 to vector<8x1xf32>
    %253 = arith.divf %251, %252 : vector<8x1xf32>
    %254 = vector.broadcast %253 : vector<8x1xf32> to vector<8x32xf32>
    %255 = arith.subf %245, %254 : vector<8x32xf32>
    %256 = arith.mulf %255, %255 : vector<8x32xf32>
    %cst_98 = arith.constant dense<0.000000e+00> : vector<8xf32>
    %257 = vector.multi_reduction <add>, %256, %cst_98 [1] : vector<8x32xf32> to vector<8xf32>
    %258 = vector.shape_cast %257 : vector<8xf32> to vector<8x1xf32>
    %cst_99 = arith.constant 3.200000e+01 : f32
    %259 = vector.broadcast %cst_99 : f32 to vector<8x1xf32>
    %260 = arith.divf %258, %259 : vector<8x1xf32>
    %cst_100 = arith.constant 9.99999996E-13 : f32
    %261 = vector.broadcast %cst_100 : f32 to vector<8x1xf32>
    %262 = arith.addf %260, %261 : vector<8x1xf32>
    %263 = math.rsqrt %262 : vector<8x1xf32>
    %264 = vector.broadcast %253 : vector<8x1xf32> to vector<8x32xf32>
    %265 = arith.subf %245, %264 : vector<8x32xf32>
    %266 = vector.broadcast %263 : vector<8x1xf32> to vector<8x32xf32>
    %267 = arith.mulf %265, %266 : vector<8x32xf32>
    %268 = vector.broadcast %247 : vector<1x32xf32> to vector<8x32xf32>
    %269 = arith.mulf %267, %268 : vector<8x32xf32>
    %270 = vector.broadcast %249 : vector<1x32xf32> to vector<8x32xf32>
    %271 = arith.addf %269, %270 : vector<8x32xf32>
    %c1_101 = arith.constant 1 : index
    %c0_102 = arith.constant 0 : index
    %c0_103 = arith.constant 0 : index
    %272 = vector.load %arg12[%c1_101, %c0_102, %c0_103] : memref<2x32x64xf32, #tpu.memory_space<vmem>>, vector<1x32x64xf32>
    %273 = vector.shape_cast %272 : vector<1x32x64xf32> to vector<32x64xf32>
    %cst_104 = arith.constant dense<0.000000e+00> : vector<8x64xf32>
    %274 = tpu.matmul %271, %273, %cst_104 {dimension_numbers = #tpu.dot_dimension_numbers<[1], [0], [0], [1], [0, 0, 1, 1], [], []>} : vector<8x32xf32>, vector<32x64xf32>, vector<8x64xf32> -> vector<8x64xf32>
    %c1_105 = arith.constant 1 : index
    %c0_106 = arith.constant 0 : index
    %c0_107 = arith.constant 0 : index
    %275 = vector.load %arg13[%c1_105, %c0_106, %c0_107] : memref<2x1x64xf32, #tpu.memory_space<vmem>>, vector<1x1x64xf32>
    %276 = vector.shape_cast %275 : vector<1x1x64xf32> to vector<1x64xf32>
    %277 = vector.broadcast %276 : vector<1x64xf32> to vector<8x64xf32>
    %278 = arith.addf %274, %277 : vector<8x64xf32>
    %279 = arith.mulf %278, %278 : vector<8x64xf32>
    %280 = arith.mulf %278, %279 : vector<8x64xf32>
    %cst_108 = arith.constant 4.471500e-02 : f32
    %281 = vector.broadcast %cst_108 : f32 to vector<8x64xf32>
    %282 = arith.mulf %281, %280 : vector<8x64xf32>
    %283 = arith.addf %278, %282 : vector<8x64xf32>
    %cst_109 = arith.constant 0.797884583 : f32
    %284 = vector.broadcast %cst_109 : f32 to vector<8x64xf32>
    %285 = arith.mulf %284, %283 : vector<8x64xf32>
    %286 = math.tanh %285 : vector<8x64xf32>
    %cst_110 = arith.constant 1.000000e+00 : f32
    %287 = vector.broadcast %cst_110 : f32 to vector<8x64xf32>
    %288 = arith.addf %287, %286 : vector<8x64xf32>
    %cst_111 = arith.constant 5.000000e-01 : f32
    %289 = vector.broadcast %cst_111 : f32 to vector<8x64xf32>
    %290 = arith.mulf %289, %288 : vector<8x64xf32>
    %291 = arith.mulf %278, %290 : vector<8x64xf32>
    %c1_112 = arith.constant 1 : index
    %c0_113 = arith.constant 0 : index
    %c0_114 = arith.constant 0 : index
    %292 = vector.load %arg14[%c1_112, %c0_113, %c0_114] : memref<2x64x32xf32, #tpu.memory_space<vmem>>, vector<1x64x32xf32>
    %293 = vector.shape_cast %292 : vector<1x64x32xf32> to vector<64x32xf32>
    %cst_115 = arith.constant dense<0.000000e+00> : vector<8x32xf32>
    %294 = tpu.matmul %291, %293, %cst_115 {dimension_numbers = #tpu.dot_dimension_numbers<[1], [0], [0], [1], [0, 0, 1, 1], [], []>} : vector<8x64xf32>, vector<64x32xf32>, vector<8x32xf32> -> vector<8x32xf32>
    %c1_116 = arith.constant 1 : index
    %c0_117 = arith.constant 0 : index
    %c0_118 = arith.constant 0 : index
    %295 = vector.load %arg15[%c1_116, %c0_117, %c0_118] : memref<2x1x32xf32, #tpu.memory_space<vmem>>, vector<1x1x32xf32>
    %296 = vector.shape_cast %295 : vector<1x1x32xf32> to vector<1x32xf32>
    %297 = vector.broadcast %296 : vector<1x32xf32> to vector<8x32xf32>
    %298 = arith.addf %294, %297 : vector<8x32xf32>
    %299 = arith.addf %271, %298 : vector<8x32xf32>
    %c1_119 = arith.constant 1 : index
    %c0_120 = arith.constant 0 : index
    %c0_121 = arith.constant 0 : index
    %300 = vector.load %arg16[%c1_119, %c0_120, %c0_121] : memref<2x1x32xf32, #tpu.memory_space<vmem>>, vector<1x1x32xf32>
    %301 = vector.shape_cast %300 : vector<1x1x32xf32> to vector<1x32xf32>
    %c1_122 = arith.constant 1 : index
    %c0_123 = arith.constant 0 : index
    %c0_124 = arith.constant 0 : index
    %302 = vector.load %arg17[%c1_122, %c0_123, %c0_124] : memref<2x1x32xf32, #tpu.memory_space<vmem>>, vector<1x1x32xf32>
    %303 = vector.shape_cast %302 : vector<1x1x32xf32> to vector<1x32xf32>
    %cst_125 = arith.constant dense<0.000000e+00> : vector<8xf32>
    %304 = vector.multi_reduction <add>, %299, %cst_125 [1] : vector<8x32xf32> to vector<8xf32>
    %305 = vector.shape_cast %304 : vector<8xf32> to vector<8x1xf32>
    %cst_126 = arith.constant 3.200000e+01 : f32
    %306 = vector.broadcast %cst_126 : f32 to vector<8x1xf32>
    %307 = arith.divf %305, %306 : vector<8x1xf32>
    %308 = vector.broadcast %307 : vector<8x1xf32> to vector<8x32xf32>
    %309 = arith.subf %299, %308 : vector<8x32xf32>
    %310 = arith.mulf %309, %309 : vector<8x32xf32>
    %cst_127 = arith.constant dense<0.000000e+00> : vector<8xf32>
    %311 = vector.multi_reduction <add>, %310, %cst_127 [1] : vector<8x32xf32> to vector<8xf32>
    %312 = vector.shape_cast %311 : vector<8xf32> to vector<8x1xf32>
    %cst_128 = arith.constant 3.200000e+01 : f32
    %313 = vector.broadcast %cst_128 : f32 to vector<8x1xf32>
    %314 = arith.divf %312, %313 : vector<8x1xf32>
    %cst_129 = arith.constant 9.99999996E-13 : f32
    %315 = vector.broadcast %cst_129 : f32 to vector<8x1xf32>
    %316 = arith.addf %314, %315 : vector<8x1xf32>
    %317 = math.rsqrt %316 : vector<8x1xf32>
    %318 = vector.broadcast %307 : vector<8x1xf32> to vector<8x32xf32>
    %319 = arith.subf %299, %318 : vector<8x32xf32>
    %320 = vector.broadcast %317 : vector<8x1xf32> to vector<8x32xf32>
    %321 = arith.mulf %319, %320 : vector<8x32xf32>
    %322 = vector.broadcast %301 : vector<1x32xf32> to vector<8x32xf32>
    %323 = arith.mulf %321, %322 : vector<8x32xf32>
    %324 = vector.broadcast %303 : vector<1x32xf32> to vector<8x32xf32>
    %325 = arith.addf %323, %324 : vector<8x32xf32>
    %cst_130 = arith.constant dense<0.000000e+00> : vector<32xf32>
    %326 = vector.multi_reduction <add>, %325, %cst_130 [0] : vector<8x32xf32> to vector<32xf32>
    %327 = vector.shape_cast %326 : vector<32xf32> to vector<1x32xf32>
    %cst_131 = arith.constant 8.000000e+00 : f32
    %328 = vector.broadcast %cst_131 : f32 to vector<1x32xf32>
    %329 = arith.divf %327, %328 : vector<1x32xf32>
    %c0_132 = arith.constant 0 : index
    %c0_133 = arith.constant 0 : index
    %c0_134 = arith.constant 0 : index
    %330 = vector.load %arg18[%c0_132, %c0_133, %c0_134] : memref<1x1x32xf32, #tpu.memory_space<vmem>>, vector<1x1x32xf32>
    %331 = vector.shape_cast %330 : vector<1x1x32xf32> to vector<1x32xf32>
    %332 = vector.shape_cast %329 : vector<1x32xf32> to vector<1x1x32xf32>
    tpu.vector_store %arg18[%c0_132, %c0_133, %c0_134], %332 {strides = array<i32>} : memref<1x1x32xf32, #tpu.memory_space<vmem>>, vector<1x1x32xf32>,
    return
  }
  func.func @transform_0(%arg0: i32) -> (i32, i32) {
    %c0_i32 = arith.constant 0 : i32
    %c0_i32_0 = arith.constant 0 : i32
    return %arg0, %c0_i32 : i32, i32
  }
  func.func @transform_1(%arg0: i32) -> (i32, i32) {
    %c0_i32 = arith.constant 0 : i32
    %c0_i32_0 = arith.constant 0 : i32
    %c0_i32_1 = arith.constant 0 : i32
    return %c0_i32, %c0_i32_0 : i32, i32
  }
  func.func @transform_2(%arg0: i32) -> (i32, i32) {
    %c0_i32 = arith.constant 0 : i32
    %c0_i32_0 = arith.constant 0 : i32
    %c0_i32_1 = arith.constant 0 : i32
    return %c0_i32, %c0_i32_0 : i32, i32
  }
  func.func @transform_3(%arg0: i32) -> (i32, i32) {
    %c0_i32 = arith.constant 0 : i32
    %c0_i32_0 = arith.constant 0 : i32
    %c0_i32_1 = arith.constant 0 : i32
    return %c0_i32, %c0_i32_0 : i32, i32
  }
  func.func @transform_4(%arg0: i32) -> (i32, i32) {
    %c0_i32 = arith.constant 0 : i32
    %c0_i32_0 = arith.constant 0 : i32
    %c0_i32_1 = arith.constant 0 : i32
    return %c0_i32, %c0_i32_0 : i32, i32
  }
  func.func @transform_5(%arg0: i32) -> (i32, i32, i32) {
    %c0_i32 = arith.constant 0 : i32
    %c0_i32_0 = arith.constant 0 : i32
    %c0_i32_1 = arith.constant 0 : i32
    %c0_i32_2 = arith.constant 0 : i32
    return %c0_i32, %c0_i32_0, %c0_i32_1 : i32, i32, i32
  }
  func.func @transform_6(%arg0: i32) -> (i32, i32, i32) {
    %c0_i32 = arith.constant 0 : i32
    %c0_i32_0 = arith.constant 0 : i32
    %c0_i32_1 = arith.constant 0 : i32
    %c0_i32_2 = arith.constant 0 : i32
    return %c0_i32, %c0_i32_0, %c0_i32_1 : i32, i32, i32
  }
  func.func @transform_7(%arg0: i32) -> (i32, i32, i32) {
    %c0_i32 = arith.constant 0 : i32
    %c0_i32_0 = arith.constant 0 : i32
    %c0_i32_1 = arith.constant 0 : i32
    %c0_i32_2 = arith.constant 0 : i32
    return %c0_i32, %c0_i32_0, %c0_i32_1 : i32, i32, i32
  }
  func.func @transform_8(%arg0: i32) -> (i32, i32, i32) {
    %c0_i32 = arith.constant 0 : i32
    %c0_i32_0 = arith.constant 0 : i32
    %c0_i32_1 = arith.constant 0 : i32
    %c0_i32_2 = arith.constant 0 : i32
    return %c0_i32, %c0_i32_0, %c0_i32_1 : i32, i32, i32
  }
  func.func @transform_9(%arg0: i32) -> (i32, i32, i32) {
    %c0_i32 = arith.constant 0 : i32
    %c0_i32_0 = arith.constant 0 : i32
    %c0_i32_1 = arith.constant 0 : i32
    %c0_i32_2 = arith.constant 0 : i32
    return %c0_i32, %c0_i32_0, %c0_i32_1 : i32, i32, i32
  }
  func.func @transform_10(%arg0: i32) -> (i32, i32, i32) {
    %c0_i32 = arith.constant 0 : i32
    %c0_i32_0 = arith.constant 0 : i32
    %c0_i32_1 = arith.constant 0 : i32
    %c0_i32_2 = arith.constant 0 : i32
    return %c0_i32, %c0_i32_0, %c0_i32_1 : i32, i32, i32
  }
  func.func @transform_11(%arg0: i32) -> (i32, i32, i32) {
    %c0_i32 = arith.constant 0 : i32
    %c0_i32_0 = arith.constant 0 : i32
    %c0_i32_1 = arith.constant 0 : i32
    %c0_i32_2 = arith.constant 0 : i32
    return %c0_i32, %c0_i32_0, %c0_i32_1 : i32, i32, i32
  }
  func.func @transform_12(%arg0: i32) -> (i32, i32, i32) {
    %c0_i32 = arith.constant 0 : i32
    %c0_i32_0 = arith.constant 0 : i32
    %c0_i32_1 = arith.constant 0 : i32
    %c0_i32_2 = arith.constant 0 : i32
    return %c0_i32, %c0_i32_0, %c0_i32_1 : i32, i32, i32
  }
  func.func @transform_13(%arg0: i32) -> (i32, i32, i32) {
    %c0_i32 = arith.constant 0 : i32
    %c0_i32_0 = arith.constant 0 : i32
    %c0_i32_1 = arith.constant 0 : i32
    %c0_i32_2 = arith.constant 0 : i32
    return %c0_i32, %c0_i32_0, %c0_i32_1 : i32, i32, i32
  }
  func.func @transform_14(%arg0: i32) -> (i32, i32, i32) {
    %c0_i32 = arith.constant 0 : i32
    %c0_i32_0 = arith.constant 0 : i32
    %c0_i32_1 = arith.constant 0 : i32
    %c0_i32_2 = arith.constant 0 : i32
    return %c0_i32, %c0_i32_0, %c0_i32_1 : i32, i32, i32
  }
  func.func @transform_15(%arg0: i32) -> (i32, i32, i32) {
    %c0_i32 = arith.constant 0 : i32
    %c0_i32_0 = arith.constant 0 : i32
    %c0_i32_1 = arith.constant 0 : i32
    %c0_i32_2 = arith.constant 0 : i32
    return %c0_i32, %c0_i32_0, %c0_i32_1 : i32, i32, i32
  }
  func.func @transform_16(%arg0: i32) -> (i32, i32, i32) {
    %c0_i32 = arith.constant 0 : i32
    %c0_i32_0 = arith.constant 0 : i32
    %c0_i32_1 = arith.constant 0 : i32
    %c0_i32_2 = arith.constant 0 : i32
    return %c0_i32, %c0_i32_0, %c0_i32_1 : i32, i32, i32
  }
  func.func @transform_17(%arg0: i32) -> (i32, i32, i32) {
    %c0_i32 = arith.constant 0 : i32
    %c0_i32_0 = arith.constant 0 : i32
    %c0_i32_1 = arith.constant 0 : i32
    return %arg0, %c0_i32, %c0_i32_0 : i32, i32, i32
  }
}

</mosaic_0001>

<bundles_post_ra>
// kernel: tpu_custom_call.1
= control target key start
LH: loop header
LB: loop body
LE: loop exit
PB: predicated region body
PF: predicated region fallthrough
CT: control target
= control target key end

     0   :  { %s4445_s0 = inlined_call_operand.hbm [shape: f32[16,32], index: 0, kind: input, shape index: {}]   ;;  %s4446_s1 = inlined_call_operand.hbm [shape: f32[8,32], index: 1, kind: input, shape index: {}]   ;;  %s4447_s2 = inlined_call_operand.vmem [shape: f32[1,32], index: 2, kind: input, shape index: {}]   ;;  %s4448_s3 = inlined_call_operand.hbm [shape: f32[1,32], index: 3, kind: input, shape index: {}]   ;;  %s4449_s4 = inlined_call_operand.hbm [shape: f32[1,32], index: 4, kind: input, shape index: {}]   ;;  %s4450_s5 = inlined_call_operand.vmem [shape: f32[2,32,96], index: 5, kind: input, shape index: {}]   ;;  %s4451_s6 = inlined_call_operand.vmem [shape: f32[2,1,96], index: 6, kind: input, shape index: {}]   ;;  %s4452_s7 = inlined_call_operand.vmem [shape: f32[2,32,32], index: 7, kind: input, shape index: {}]   ;;  %s4453_s8 = inlined_call_operand.vmem [shape: f32[2,1,32], index: 8, kind: input, shape index: {}]   ;;  %s4454_s9 = inlined_call_operand.vmem [shape: f32[2,1,32], index: 9, kind: input, shape index: {}]   ;;  %s4455_s10 = inlined_call_operand.vmem [shape: f32[2,1,32], index: 10, kind: input, shape index: {}]   ;;  %s4456_s11 = inlined_call_operand.vmem [shape: f32[2,32,64], index: 11, kind: input, shape index: {}]   ;;  %s4457_s12 = inlined_call_operand.vmem [shape: f32[2,1,64], index: 12, kind: input, shape index: {}]   ;;  %s4458_s13 = inlined_call_operand.vmem [shape: f32[2,64,32], index: 13, kind: input, shape index: {}]   ;;  %s4459_s14 = inlined_call_operand.vmem [shape: f32[2,1,32], index: 14, kind: input, shape index: {}]   ;;  %s4460_s15 = inlined_call_operand.vmem [shape: f32[2,1,32], index: 15, kind: input, shape index: {}]   ;;  %s4461_s16 = inlined_call_operand.vmem [shape: f32[2,1,32], index: 16, kind: input, shape index: {}]   ;;  %s4462_s17 = inlined_call_operand.hbm [shape: f32[2,1,32], index: 17, kind: output, shape index: {}]  }
   0x1   :  { %4487 = sst [smem:[#allocation17_spill]] %s4445_s0 }
   0x2   :  { %4488 = sst [smem:[#allocation18_spill]] %s4446_s1 }
   0x3   :  { %4489 = sst [smem:[#allocation19_spill]] %s4447_s2 }
   0x4   :  { %4490 = sst [smem:[#allocation20_spill]] %s4448_s3 }
   0x5   :  { %4491 = sst [smem:[#allocation21_spill]] %s4449_s4 }
   0x6   :  { %4492 = sst [smem:[#allocation22_spill]] %s4450_s5 }
   0x7   :  { %4493 = sst [smem:[#allocation23_spill]] %s4451_s6 }
   0x8   :  { %4494 = sst [smem:[#allocation24_spill]] %s4457_s12 }
   0x9   :  { %4495 = sst [smem:[#allocation25_spill]] %s4458_s13 }
   0xa   :  { %4496 = sst [smem:[#allocation26_spill]] %s4459_s14 }
   0xb   :  { %4497 = sst [smem:[#allocation27_spill]] %s4460_s15 }
   0xc   :  { %4498 = sst [smem:[#allocation28_spill]] %s4461_s16 }
   0xd   :  { %4499 = sst [smem:[#allocation29_spill]] %s4462_s17 }
   0xe   :  { %22 = vsyncpa [#allocation3], 0 }
   0xf   :  { %24 = vsyncpa [#allocation3 + $0x1], 0 }
  0x10   :  { %25 = vsyncpa [#allocation6], 0 }
  0x11   :  { %26 = vsyncpa [#allocation9], 0 }
  0x12   :  { %27 = vsyncpa [#allocation4], 0 }
  0x13   :  { %29 = vsyncpa [#allocation4 + $0x1], 0  ;;  %s3809_s24 = smov 0   ;;  %s3811_s25 = smov 0  }
  0x14   :  { %s3813_s26 = smov 0   ;;  %s3815_s27 = smov 0  }
  0x15 LB: > { %4500 = sst [smem:[#allocation15_spill]] %s3689_s24  ;;  %s3830_s28 = sadd.s32 4294967295, %s3701_s27   ;;  %s3701_s27 = sphi %s3815_s27, %s4544_s27   ;;  %s3697_s26 = sphi %s3813_s26, %s4543_s26   ;;  %s3693_s25 = sphi %s3811_s25, %s4542_s25   ;;  %s3689_s24 = sphi %s3809_s24, %s4541_s24  }
  0x16   : > { %s2960_s29 = sadd.s32 4294967294, %s3701_s27   ;;  %p55_p0 = scmp.ne.s32.totalorder %s3693_s25, %s3689_s24 }
  0x17   : > { %p4472_p1 = scmp.eq.s32.totalorder %s3830_s28, 0  ;;  %p421_p3 = scmp.eq.s32.totalorder %s2960_s29, 1 }
  0x18   : > { %p2961_p5 = scmp.ge.s32.totalorder %s3701_s27, 1  ;;  %p428_p7 = scmp.lt.s32.totalorder %s3701_s27, 3 }
  0x19   : > { %p3839_p4 = por %p4472_p1, %p55_p0  ;;  %p3844_p6 = por %p421_p3, %p55_p0 }
  0x1a   : > { %p3849_p8 = pnand %p2961_p5, %p428_p7  ;;  %s3703_s19 = smov [#allocation5]  }
  0x1b   : > { %s4501_s0 = scalar_select %p3839_p4, 1, 0 }
  0x1c   : > { %s4502_s30 = scalar_select %p3844_p6, 1, 0 }
  0x1d   : > { %s4504_s18 = scalar_select %p3849_p8, 1, 0 }
  0x1e   : > { %4503 = sst [smem:[#allocation16_spill]] %s4502_s30  ;;  %s441_s1 = sshll.u32 %s3703_s19, 4  ;;  %s442_s1 = int_to_ptr.vmem [resolvable:$true] %s441_s1 }
  0x1f   : > { %p3395_p10 = pneg %p3849_p8  ;;  %s3704_s20 = smov [#allocation7]  }
  0x20   : > { %s455_s21 = sshll.u32 %s3704_s20, 4  ;;  %s3705_s23 = smov [#allocation8]   ;;  %s3862_s21 = int_to_ptr.vmem [resolvable:$true] %s455_s21 }
  0x21   : > { %p3858_p11 = pnand %p3395_p10, %p4472_p1  ;;  %s466_s29 = sshll.u32 %s3705_s23, 4  ;;  %s3864_s29 = int_to_ptr.vmem [resolvable:$true] %s466_s29 }
  0x22   : > { %s4506_s24 = sld [smem:[#allocation18_spill]] }
  0x23   : > { %p3874_p13 = pneg %p3858_p11 }
  0x28   : > { %s4507_s17 = smov %s4506_s24  ;;  %s3513_s16 = scalar_lea.hbm %s4506_s24, 128 }
  0x29   : > { %p3514_p12 = scmp.ne.s32.totalorder %s4507_s17, %s3513_s16  ;;  %p3520_p5 = scmp.lt.u32.totalorder %s3513_s16, %s4507_s17 }
  0x2b   : > { %p3516_p0 = pnand %p3874_p13, %p3514_p12 }
  0x2d   : > { %p3517_p3 = pneg %p3516_p0 }
  0x2f   : > { %p3522_p7 = pnand %p3520_p5, %p3517_p3 }
  0x31   : > { %3525 = shalt.err (!%p3522_p7)
}
  0x32   : > { %s3526_s24 = scalar_lea.vmem %s442_s1, 128  ;;  %p3534_p2 = scmp.lt.s32.totalorder %s442_s1, %s442_s1 }
  0x33   : > { %p3527_p10 = scmp.ne.s32.totalorder %s442_s1, %s3526_s24  ;;  %p3535_p6 = scmp.lt.s32.totalorder %s3526_s24, %s3526_s24 }
  0x35   : > { %p3529_p9 = pnand %p3527_p10, %p3874_p13  ;;  %p3536_p4 = por %p3535_p6, %p3534_p2 }
  0x37   : > { %p3530_p1 = pneg %p3529_p9 }
  0x39   : > { %p3537_p8 = pnand %p3536_p4, %p3530_p1 }
  0x3b   : > { %3540 = shalt.err (!%p3537_p8)
}
  0x3c   : > { %3398 = dma.hbm_to_vmem [thread:$0]  (!%p3858_p11), %s4507_s17, 128, %s442_s1, [#allocation6]  }
  0x3d   : > { %s4509_s3 = sld [smem:[#allocation20_spill]] }
  0x43   : > { %s3541_s30 = scalar_lea.hbm %s4509_s3, 16 }
  0x44   : > { %p3542_p9 = scmp.ne.s32.totalorder %s4509_s3, %s3541_s30  ;;  %p3548_p1 = scmp.lt.u32.totalorder %s3541_s30, %s4509_s3 }
  0x46   : > { %p3544_p12 = pnand %p3542_p9, %p3874_p13 }
  0x48   : > { %p3545_p2 = pneg %p3544_p12 }
  0x4a   : > { %p3550_p4 = pnand %p3548_p1, %p3545_p2 }
  0x4c   : > { %3553 = shalt.err (!%p3550_p4)
}
  0x4d   : > { %s3554_s1 = scalar_lea.vmem %s3862_s21, 16  ;;  %s3561_s14 = scalar_lea.vmem %s3862_s21, 32 }
  0x4e   : > { %p3555_p6 = scmp.ne.s32.totalorder %s3862_s21, %s3554_s1  ;;  %p3562_p3 = scmp.lt.s32.totalorder %s3862_s21, %s3862_s21 }
  0x4f   : > { %p3563_p5 = scmp.lt.s32.totalorder %s3561_s14, %s3554_s1 }
  0x50   : > { %p3557_p8 = pnand %p3555_p6, %p3874_p13 }
  0x51   : > { %p3564_p7 = por %p3563_p5, %p3562_p3 }
  0x52   : > { %p3558_p0 = pneg %p3557_p8 }
  0x54   : > { %p3565_p10 = pnand %p3564_p7, %p3558_p0 }
  0x56   : > { %3568 = shalt.err (!%p3565_p10)
}
  0x57   : > { %3401 = dma.hbm_to_vmem [thread:$0]  (!%p3858_p11), %s4509_s3, 16, %s3862_s21, [#allocation6]  }
  0x58   : > { %s4510_s4 = sld [smem:[#allocation21_spill]] }
  0x5e   : > { %s3569_s30 = scalar_lea.hbm %s4510_s4, 16 }
  0x5f   : > { %p3570_p9 = scmp.ne.s32.totalorder %s4510_s4, %s3569_s30  ;;  %p3576_p1 = scmp.lt.u32.totalorder %s3569_s30, %s4510_s4 }
  0x61   : > { %p3572_p12 = pnand %p3570_p9, %p3874_p13 }
  0x63   : > { %p3573_p2 = pneg %p3572_p12 }
  0x65   : > { %p3578_p4 = pnand %p3576_p1, %p3573_p2 }
  0x67   : > { %3581 = shalt.err (!%p3578_p4)
}
  0x68   : > { %s3582_s21 = scalar_lea.vmem %s3864_s29, 16  ;;  %s3589_s14 = scalar_lea.vmem %s3864_s29, 32 }
  0x69   : > { %p3583_p6 = scmp.ne.s32.totalorder %s3864_s29, %s3582_s21  ;;  %p3590_p3 = scmp.lt.s32.totalorder %s3864_s29, %s3864_s29 }
  0x6a   : > { %p3591_p5 = scmp.lt.s32.totalorder %s3589_s14, %s3582_s21 }
  0x6b   : > { %p3585_p8 = pnand %p3583_p6, %p3874_p13 }
  0x6c   : > { %p3592_p7 = por %p3591_p5, %p3590_p3 }
  0x6d   : > { %p3586_p0 = pneg %p3585_p8 }
  0x6f   : > { %p3593_p10 = pnand %p3592_p7, %p3586_p0 }
  0x71   : > { %3596 = shalt.err (!%p3593_p10)
}
  0x72   : > { %3404 = dma.hbm_to_vmem [thread:$0]  (!%p3858_p11), %s4510_s4, 16, %s3864_s29, [#allocation9]  }
  0x73   : > { %s3939_s20 = sadd.s32 1, %s3701_s27   ;;  %s42_s12 = sadd.s32 1, %s3697_s26 }
  0x74   : > { %s39_s22 = ssub.s32 %s3701_s27, %s3939_s20  ;;  %p49_p9 = scmp.ne.s32.totalorder %s3697_s26, %s3693_s25 }
  0x75   : > { %p40_p13 = scmp.eq.s32.totalorder %s39_s22, 0  ;;  %p50_p12 = scmp.eq.s32.totalorder %s3701_s27, 0 }
  0x76   : > { %p3416_p2 = scmp.lt.s32.totalorder %s3701_s27, 2  ;;  %p4511_p4 = scmp.eq.s32.totalorder %s3830_s28, 1 }
  0x77   : > { %s3949_s16 = scalar_select %p40_p13, %s3697_s26, %s42_s12  }
  0x78   : > { %p51_p1 = por %p50_p12, %p49_p9  ;;  %p3953_p6 = por %p4511_p4, %p49_p9 }
  0x79   : > { %s513_s19 = sand.u32 1, %s3697_s26   ;;  %s2967_s23 = sshll.u32 %s3701_s27, 7 }
  0x7a   : > { %s2966_s29 = sshll.u32 %s513_s19, 3  ;;  %s4513_s21 = sld [smem:[#allocation17_spill]] }
  0x7b   : > { %s517_s13 = scalar_lea.vmem [#allocation2], %s2966_s29  ;;  %p3964_p11 = pnand %p3416_p2, %p51_p1 }
  0x7c   : > { %s524_s15 = sshll.u32 %s517_s13, 4  ;;  %s514_s12 = scalar_lea.sflag [#allocation3], %s513_s19  ;;  %s3968_s15 = int_to_ptr.vmem [resolvable:$true] %s524_s15 }
  0x7d   : > { %p3599_p0 = pneg %p3964_p11 }
  0x80   : > { %s3962_s14 = scalar_lea.hbm %s4513_s21, %s2967_s23  ;;  %s3602_s24 = scalar_lea.hbm %s4513_s21, 256 }
  0x81   : > { %s3597_s3 = scalar_lea.hbm %s3962_s14, 128  ;;  %p3603_p7 = scmp.lt.u32.totalorder %s3962_s14, %s4513_s21 }
  0x82   : > { %p3598_p8 = scmp.ne.s32.totalorder %s3962_s14, %s3597_s3  ;;  %p3604_p10 = scmp.lt.u32.totalorder %s3602_s24, %s3597_s3 }
  0x83   : > { %p3606_p9 = scmp.lt.u32.totalorder %s3597_s3, %s3962_s14 }
  0x84   : > { %p3600_p3 = pnand %p3599_p0, %p3598_p8  ;;  %p3605_p13 = por %p3604_p10, %p3603_p7 }
  0x86   : > { %p3601_p5 = pneg %p3600_p3  ;;  %p3607_p12 = por %p3606_p9, %p3605_p13 }
  0x88   : > { %p3608_p2 = pnand %p3607_p12, %p3601_p5 }
  0x8a   : > { %3611 = shalt.err (!%p3608_p2)
}
  0x8b   : > { %s3612_s19 = scalar_lea.vmem %s3968_s15, 128  ;;  %s3706_s23 = smov [#allocation2]  }
  0x8c   : > { %p3613_p1 = scmp.ne.s32.totalorder %s3968_s15, %s3612_s19  ;;  %s3617_s29 = sshll.u32 %s3706_s23, 4  ;;  %s3618_s29 = int_to_ptr.vmem [resolvable:$false] %s3617_s29 }
  0x8d   : > { %s3619_s1 = scalar_lea.vmem %s3618_s29, 256  ;;  %p3620_p3 = scmp.lt.s32.totalorder %s3968_s15, %s3618_s29 }
  0x8e   : > { %p3615_p4 = pnand %p3613_p1, %p3599_p0  ;;  %p3621_p7 = scmp.lt.s32.totalorder %s3619_s1, %s3612_s19 }
  0x90   : > { %p3616_p8 = pneg %p3615_p4  ;;  %p3622_p10 = por %p3621_p7, %p3620_p3 }
  0x92   : > { %p3623_p13 = pnand %p3622_p10, %p3616_p8 }
  0x94   : > { %3626 = shalt.err (!%p3623_p13)
}
  0x95   : > { %3408 = dma.hbm_to_vmem [thread:$0]  (!%p3964_p11), %s3962_s14, 128, %s3968_s15, %s514_s12  }
  0x96   : > { %p4515_p5 = scmp.ne.s32.totalorder %s4504_s18, 0 }
  0x97   : > { %s3998_s3 = sand.u32 (!%p4515_p5), 1, %s3693_s25   ;;  %p4516_p0 = scmp.ne.s32.totalorder (!%p4515_p5), %s4501_s0, 0 }
  0x98   : > { %533 = sbr.rel (%p4515_p5) target bundleno = 5736 (0x1668), region = 88  ;;  %s2969_s24 = sshll.u32 (!%p4515_p5), %s3998_s3, 3 }
  0x99   : > { %s536_s13 = scalar_lea.sflag (!%p4515_p5), [#allocation3], %s3998_s3  ;;  %s539_s19 = scalar_lea.vmem (!%p4515_p5), [#allocation2], %s2969_s24 }
  0x9f   : > { %3672 = dma.done.wait (%p4516_p0), %s536_s13, 128  }
  0xa0   : > { %3674 = vsyncadd (%p4516_p0), %s536_s13, 4294967168  ;;  %p4517_p9 = scmp.eq.s32.totalorder %s3830_s28, 0 }
  0xa2   : > { %3676 = dma.done.wait (%p4517_p9), [#allocation6], 144   ;;  %p4518_p11 = pmov %p4517_p9 }
  0xa3   : > { %p4519_p12 = pmov %p4517_p9 }
  0xa4   : > { %3678 = vsyncadd (%p4518_p11), [#allocation6], 4294967152 }
  0xa5   : > { %3680 = dma.done.wait (%p4519_p12), [#allocation9], 16   ;;  %p4520_p2 = pmov %p4517_p9 }
  0xa6   : > { %v601_v0 = vld [vmem:[%s539_s19] sm:$0xff]  ;;  %v602_v1 = vld [vmem:[#allocation5] sm:$0xff]  ;;  %s4521_s2 = sld [smem:[#allocation19_spill]]  ;;  %vm614_vm0 = vcmask 261120   ;;  %s4522_s5 = sld [smem:[#allocation22_spill]]  ;;  %v3707_v14 = vmov 0.0|0.0  }
  0xa7   : > { %3682 = vsyncadd (%p4520_p2), [#allocation9], 4294967280  ;;  %v603_v3 = vadd.f32 %v602_v1, %v601_v0  ;;  %3319 = vmatprep.subr.bf16.mxu1 %v3707_v14  ;;  %vm3708_vm1 = vmmov 0   ;;  %v3709_v17 = vmov 0.0   ;;  %v2974_v23 = vld [vmem:[#allocation7] ss:$0 sm:$0xff] }
  0xa8   : > { %3143 = vmatprep.mubr.msk.f32.mxu1 %vm3708_vm1, %v3709_v17  ;;  %3156 = vmatprep.subr.mxu0 %v3709_v17  ;;  %v2975_v25 = vld [vmem:[#allocation8] ss:$0 sm:$0xff]  ;;  %s4523_s6 = sld [smem:[#allocation23_spill]]  ;;  %s4483_s18 = smov 104   ;;  %vm744_vm2 = vcmask 64512   ;;  %vm1408_vm3 = vcmask 130048  }
  0xa9   : > { %3158 = vmatprep.mubr.msk.f32.mxu0 %vm3708_vm1, %v3709_v17  ;;  %s4485_s14 = smov 120   ;;  %s3712_s0 = smov 112   ;;  %vm1410_vm4 = vcmask 195584   ;;  %vm1634_vm5 = vcmask 523264   ;;  %vm2850_vm6 = vcmask 253952  }
  0xaa   : > { %s4481_s15 = smov 96   ;;  %s4476_s22 = smov 64  }
  0xab   : > { %s4480_s12 = smov 8   ;;  %s4478_s23 = smov 24  }
  0xac   : > { %v2973_v2 = vld [vmem:[%s4521_s2] ss:$0 sm:$0xff]  ;;  %v644_v12 = vld [vmem:[%s4522_s5 + $0x8] sm:$0xff]  ;;  %v645_v13 = vld [vmem:[%s4522_s5 + $0x10] sm:$0xff]  ;;  %s4479_s29 = smov 16   ;;  %s4526_s13 = sld [smem:[#allocation26_spill]] }
  0xad   : > { %v611_v4 = vadd.f32 %v2973_v2, %v603_v3  ;;  %v643_v11 = vld [vmem:[%s4522_s5] sm:$0xff]  ;;  %v646_v16 = vld [vmem:[%s4522_s5 + $0x18] sm:$0xff]  ;;  %s4530_s19 = smov 104   ;;  %s4533_s1 = smov 8  }
  0xae   : > { %v3320_v15 = vpack.c.bf16 %v644_v12, %v643_v11  ;;  %v3323_v18 = vpack.c.bf16 %v646_v16, %v645_v13  ;;  %v2976_v28 = vld [vmem:[%s4523_s6] ss:$0 sm:$0xff]  ;;  %s4535_s24 = smov 24  }
  0xaf   : > { %v615_v5 = vsel %vm614_vm0, %v611_v4, 0.0 }
  0xb0   : > { %616 = vadd.xlane.f32.xlu0 %v615_v5  ;;  %3321 = vmatpush3.bf16.msra.mxu1 %v3320_v15 }
  0xb1   : > { %3322 = vmatprep.subr.bf16.mxu1 %v3707_v14 }
  0xb4   : > { %3324 = vmatpush3.bf16.msra.mxu1 %v3323_v18 }
  0xb5   : > { %3146 = vmatprep.subr.mxu1 %v3709_v17 }
 0x13d   : > { %v617_v6 = vpop.xlane.xlu0 %616 }
 0x13e   : > { %v619_v7 = vmul.f32 0.03125, %v617_v6 }
 0x140   : > { %v620_v8 = vsub.f32 %v611_v4, %v619_v7 }
 0x142   : > { %v621_v9 = vmul.f32 %v620_v8, %v620_v8 }
 0x144   : > { %v622_v10 = vsel %vm614_vm0, %v621_v9, 0.0 }
 0x145   : > { %623 = vadd.xlane.f32.xlu0 %v622_v10 }
 0x1d2   : > { %v624_v19 = vpop.xlane.xlu0 %623 }
 0x1d3   : > { %v625_v20 = vmul.f32 0.03125, %v624_v19 }
 0x1d5   : > { %v626_v21 = vadd.f32 1e-12, %v625_v20 }
 0x1d7   : > { %3467 = vrsqrt.f32 %v626_v21 }
 0x1e1   : > { %v3468_v22 = vpop.eup %3467 }
 0x1e2   : > { %v628_v24 = vmul.f32 %v3468_v22, %v620_v8 }
 0x1e4   : > { %v635_v26 = vmul.f32 %v2974_v23, %v628_v24 }
 0x1e6   : > { %v4039_v27 = vadd.f32 %v2975_v25, %v635_v26 }
 0x1e8   : > { %3144 = vmatmul.mubr.msk.f32.vlgmr.msra.gmra.mrb[0].mxu1 %vm614_vm0, %v4039_v27 }
 0x1e9   : > { %3148 = vmatprep.mubr.msk.f32.mxu1 %vm3708_vm1, %v3709_v17 }
 0x2bb   : > { %v723_v29 = vpop.f32.mrb[0].mxu1 }
 0x2bc   : > { %v724_v30 = vadd.f32 %v2976_v28, %v723_v29  ;;  %v3145_v31 = vpop.f32.mrb[1].mxu1 }
 0x2be   : > { %740 = vrot.lane.b32.xlu0 %v724_v30, %s4483_s18  ;;  %736 = vrot.lane.b32.xlu1 %v724_v30, %s4485_s14  ;;  %v727_v32 = vmul.f32 0.35355338, %v724_v30 }
 0x2c2   : > { %738 = vrot.lane.b32.xlu1 %v724_v30, %s3712_s0  ;;  %733 = vrot.lane.b32.xlu0 %v727_v32, %s4483_s18  ;;  %s4528_s18 = sld [smem:[#allocation28_spill]] }
 0x2c6   : > { %742 = vrot.lane.b32.xlu1 %v724_v30, %s4481_s15 }
 0x2ca   : > { %729 = vrot.lane.b32.xlu1 %v727_v32, %s4485_s14  ;;  %s4534_s14 = smov 16  }
 0x330   : > { %v737_v33 = vpop.permute.xlu1 %736  ;;  %v4059_v35 = vpop.permute.xlu0 %740 }
 0x331   : > { %819 = vrot.lane.b32.xlu1 %v737_v33, %s4481_s15 }
 0x334   : > { %v4055_v34 = vpop.permute.xlu1 %738  ;;  %v734_v41 = vpop.permute.xlu0 %733 }
 0x335   : > { %895 = vrot.lane.b32.xlu1 %v4055_v34, %s4481_s15 }
 0x338   : > { %v743_v36 = vpop.permute.xlu1 %742 }
 0x339   : > { %3147 = vmatpush3.xpose.msk.msra.mxu1 %vm744_vm2, %v743_v36  ;;  %971 = vrot.lane.b32.xlu1 %v4059_v35, %s4481_s15  ;;  %v1415_v36 = vld [vmem:[%s4452_s7 + $0x18] sm:$0xff]  ;;  %s4525_s15 = sld [smem:[#allocation24_spill]] }
 0x33a   : > { %3151 = vmatprep.subr.mxu1 %v3709_v17 }
 0x33c   : > { %3149 = vmatmul.mubr.msk.f32.vlgmr.msra.gmra.mrb[2].mxu1 %vm744_vm2, %v727_v32  ;;  %v730_v37 = vpop.permute.xlu1 %729 }
 0x33d   : > { %731 = vrot.lane.b32.xlu1 %v727_v32, %s3712_s0  ;;  %3153 = vmatprep.mubr.msk.f32.mxu1 %vm3708_vm1, %v3709_v17  ;;  %v1412_v32 = vld [vmem:[%s4452_s7] sm:$0xff] }
 0x3a3   : > { %v820_v38 = vpop.permute.xlu1 %819 }
 0x3a4   : > { %3152 = vmatpush3.xpose.msk.msra.mxu1 %vm744_vm2, %v820_v38 }
 0x3a5   : > { %3161 = vmatprep.subr.mxu1 %v3709_v17 }
 0x3a7   : > { %v896_v39 = vpop.permute.xlu1 %895  ;;  %3154 = vmatmul.mubr.msk.f32.vlgmr.msra.gmra.mrb[4].mxu1 %vm744_vm2, %v730_v37 }
 0x3a8   : > { %3157 = vmatpush3.xpose.msk.msra.mxu0 %vm744_vm2, %v896_v39  ;;  %3163 = vmatprep.mubr.msk.f32.mxu1 %vm3708_vm1, %v3709_v17 }
 0x3a9   : > { %3166 = vmatprep.subr.mxu0 %v3709_v17 }
 0x3ab   : > { %v972_v40 = vpop.permute.xlu1 %971 }
 0x3ac   : > { %3162 = vmatpush3.xpose.msk.msra.mxu1 %vm744_vm2, %v972_v40 }
 0x3ad   : > { %3171 = vmatprep.subr.mxu1 %v3709_v17 }
 0x3af   : > { %v732_v42 = vpop.permute.xlu1 %731  ;;  %3164 = vmatmul.mubr.msk.f32.vlgmr.msra.gmra.mrb[6].mxu1 %vm744_vm2, %v734_v41 }
 0x3b0   : > { %3159 = vmatmul.mubr.msk.f32.vlgmr.msra.gmra.mrb[0].mxu0 %vm744_vm2, %v732_v42  ;;  %3173 = vmatprep.mubr.msk.f32.mxu1 %vm3708_vm1, %v3709_v17 }
 0x3b1   : > { %3168 = vmatprep.mubr.msk.f32.mxu0 %vm3708_vm1, %v3709_v17 }
 0x40f   : > { %v815_v43 = vpop.f32.mrb[2].mxu1 }
 0x410   : > { %v3150_v44 = vpop.f32.mrb[3].mxu1  ;;  %v1047_v45 = vsel %vm744_vm2, %v815_v43, -inf }
 0x411   : > { %1048 = vmax.xlane.f32.xlu1 %v1047_v45 }
 0x47a   : > { %v891_v46 = vpop.f32.mrb[4].mxu1 }
 0x47b   : > { %v3155_v47 = vpop.f32.mrb[5].mxu1  ;;  %v1050_v48 = vsel %vm744_vm2, %v891_v46, -inf }
 0x47c   : > { %1051 = vmax.xlane.f32.xlu0 %v1050_v48 }
 0x482   : > { %v1043_v49 = vpop.f32.mrb[6].mxu1 }
 0x483   : > { %v967_v50 = vpop.f32.mrb[0].mxu0  ;;  %v3165_v51 = vpop.f32.mrb[7].mxu1  ;;  %v1056_v52 = vsel %vm744_vm2, %v1043_v49, -inf }
 0x484   : > { %v3160_v53 = vpop.f32.mrb[1].mxu0  ;;  %1057 = vmax.xlane.f32.xlu1 %v1056_v52  ;;  %v1053_v54 = vsel %vm744_vm2, %v967_v50, -inf }
 0x485   : > { %1054 = vmax.xlane.f32.xlu0 %v1053_v54 }
 0x495   : > { %1167 = vrot.lane.b32.xlu1 %v737_v33, %s4476_s22  ;;  %v1413_v33 = vld [vmem:[%s4452_s7 + $0x8] sm:$0xff] }
 0x49b   : > { %1091 = vrot.lane.b32.xlu0 %v724_v30, %s4476_s22 }
 0x49e   : > { %v1049_v55 = vpop.xlane.xlu1 %1048 }
 0x49f   : > { %v1059_v56 = vsub.f32 %v815_v43, %v1049_v55 }
 0x4a1   : > { %v1063_v57 = vmul.f32 1.442695, %v1059_v56 }
 0x4a3   : > { %3469 = vpow2.f32 %v1063_v57 }
 0x4ad   : > { %v3470_v58 = vpop.eup %3469 }
 0x4ae   : > { %v1071_v59 = vsel %vm744_vm2, %v3470_v58, 0.0 }
 0x4ba   : > { %1072 = vadd.xlane.f32.xlu0 %v1071_v59 }
 0x509   : > { %v1052_v60 = vpop.xlane.xlu0 %1051 }
 0x50a   : > { %v1060_v61 = vsub.f32 %v891_v46, %v1052_v60 }
 0x50c   : > { %v1065_v62 = vmul.f32 1.442695, %v1060_v61  ;;  %v1526_v61 = vld [vmem:[%s4456_s11] sm:$0xff] }
 0x50e   : > { %3471 = vpow2.f32 %v1065_v62  ;;  %v1527_v62 = vld [vmem:[%s4456_s11 + $0x8] sm:$0xff] }
 0x511   : > { %v1058_v63 = vpop.xlane.xlu1 %1057 }
 0x512   : > { %v1062_v0 = vsub.f32 %v1043_v49, %v1058_v63  ;;  %v1055_v1 = vpop.xlane.xlu0 %1054  ;;  %v3332_v63 = vpack.c.bf16 %v1527_v62, %v1526_v61  ;;  %v2999_v62 = vld [vmem:[%s4528_s18] ss:$0 sm:$0xff] }
 0x513   : > { %v1061_v2 = vsub.f32 %v967_v50, %v1055_v1  ;;  %v2990_v50 = vld [vmem:[%s4453_s8] ss:$0 sm:$0xff] }
 0x514   : > { %v1069_v3 = vmul.f32 1.442695, %v1062_v0  ;;  %v1529_v0 = vld [vmem:[%s4456_s11 + $0x18] sm:$0xff] }
 0x515   : > { %v1067_v4 = vmul.f32 1.442695, %v1061_v2  ;;  %v1168_v5 = vpop.permute.xlu1 %1167 }
 0x516   : > { %3473 = vpow2.f32 %v1069_v3  ;;  %v1092_v6 = vpop.permute.xlu0 %1091  ;;  %3172 = vmatpush3.msra.mxu1 %v1168_v5 }
 0x517   : > { %3475 = vpow2.f32 %v1067_v4  ;;  %3167 = vmatpush3.msra.mxu0 %v1092_v6  ;;  %3181 = vmatprep.subr.mxu1 %v3709_v17  ;;  %v2992_v6 = vld [vmem:[%s4454_s9] ss:$0 sm:$0xff] }
 0x518   : > { %v3472_v7 = vpop.eup %3471  ;;  %3176 = vmatprep.subr.mxu0 %v3709_v17 }
 0x519   : > { %v1074_v8 = vsel %vm744_vm2, %v3472_v7, 0.0 }
 0x51a   : > { %1075 = vadd.xlane.f32.xlu1 %v1074_v8  ;;  %v2993_v8 = vld [vmem:[%s4455_s10] ss:$0 sm:$0xff] }
 0x520   : > { %v3474_v9 = vpop.eup %3473 }
 0x521   : > { %v3476_v10 = vpop.eup %3475  ;;  %v1080_v11 = vsel %vm744_vm2, %v3474_v9, 0.0 }
 0x522   : > { %1081 = vadd.xlane.f32.xlu1 %v1080_v11  ;;  %v1077_v12 = vsel %vm744_vm2, %v3476_v10, 0.0 }
 0x523   : > { %1078 = vadd.xlane.f32.xlu0 %v1077_v12 }
 0x533   : > { %1243 = vrot.lane.b32.xlu1 %v4055_v34, %s4476_s22  ;;  %v3326_v34 = vpack.c.bf16 %v1413_v33, %v1412_v32 }
 0x539   : > { %1319 = vrot.lane.b32.xlu0 %v4059_v35, %s4476_s22  ;;  %v1414_v35 = vld [vmem:[%s4452_s7 + $0x10] sm:$0xff]  ;;  %s4524_s22 = sld [smem:[#allocation25_spill]] }
 0x53a   : > { %v3329_v37 = vpack.c.bf16 %v1415_v36, %v1414_v35 }
 0x53f   : > { %v1619_v11 = vld [vmem:[%s4524_s22] sm:$0xff]  ;;  %v1620_v12 = vld [vmem:[%s4524_s22 + $0x8] sm:$0xff] }
 0x547   : > { %v1073_v13 = vpop.xlane.xlu0 %1072 }
 0x548   : > { %3477 = vrcp.f32 %v1073_v13  ;;  %v3338_v13 = vpack.c.bf16 %v1620_v12, %v1619_v11 }
 0x552   : > { %v3478_v15 = vpop.eup %3477 }
 0x553   : > { %v1087_v16 = vmul.f32 %v3478_v15, %v3470_v58  ;;  %v1621_v15 = vld [vmem:[%s4524_s22 + $0x10] sm:$0xff] }
 0x555   : > { %3169 = vmatmul.mubr.msk.f32.vlgmr.msra.gmra.mrb[2].mxu0 %vm744_vm2, %v1087_v16  ;;  %v1622_v16 = vld [vmem:[%s4524_s22 + $0x18] sm:$0xff] }
 0x556   : > { %3178 = vmatprep.mubr.msk.f32.mxu0 %vm3708_vm1, %v3709_v17 }
 0x5a7   : > { %v1076_v18 = vpop.xlane.xlu1 %1075 }
 0x5a8   : > { %3479 = vrcp.f32 %v1076_v18  ;;  %v3341_v18 = vpack.c.bf16 %v1622_v16, %v1621_v15 }
 0x5af   : > { %v1082_v19 = vpop.xlane.xlu1 %1081 }
 0x5b0   : > { %3481 = vrcp.f32 %v1082_v19  ;;  %v1079_v20 = vpop.xlane.xlu0 %1078  ;;  %v1623_v19 = vld [vmem:[%s4524_s22 + $0x20] sm:$0xff] }
 0x5b1   : > { %3483 = vrcp.f32 %v1079_v20  ;;  %v1624_v20 = vld [vmem:[%s4524_s22 + $0x28] sm:$0xff] }
 0x5b2   : > { %v3480_v21 = vpop.eup %3479 }
 0x5b3   : > { %v1088_v22 = vmul.f32 %v3480_v21, %v3472_v7  ;;  %v1244_v23 = vpop.permute.xlu1 %1243  ;;  %v3344_v21 = vpack.c.bf16 %v1624_v20, %v1623_v19 }
 0x5b4   : > { %v1320_v24 = vpop.permute.xlu0 %1319  ;;  %3177 = vmatpush3.msra.mxu0 %v1244_v23  ;;  %v1626_v23 = vld [vmem:[%s4524_s22 + $0x38] sm:$0xff] }
 0x5b5   : > { %3174 = vmatmul.mubr.msk.f32.vlgmr.msra.gmra.mrb[8].mxu1 %vm744_vm2, %v1088_v22  ;;  %3325 = vmatprep.subr.bf16.mxu0 %v3707_v14  ;;  %v1625_v22 = vld [vmem:[%s4524_s22 + $0x30] sm:$0xff] }
 0x5b6   : > { %3182 = vmatpush3.msra.mxu1 %v1320_v24  ;;  %3183 = vmatprep.mubr.msk.f32.mxu1 %vm3708_vm1, %v3709_v17  ;;  %v3347_v24 = vpack.c.bf16 %v1626_v23, %v1625_v22 }
 0x5b7   : > { %3331 = vmatprep.subr.bf16.mxu1 %v3707_v14 }
 0x5ba   : > { %v3482_v25 = vpop.eup %3481 }
 0x5bb   : > { %v3484_v26 = vpop.eup %3483  ;;  %v1090_v28 = vmul.f32 %v3482_v25, %v3474_v9  ;;  %v2994_v25 = vld [vmem:[%s4525_s15] ss:$0 sm:$0xff] }
 0x5bc   : > { %v1089_v29 = vmul.f32 %v3484_v26, %v3476_v10 }
 0x5bd   : > { %3184 = vmatmul.mubr.msk.f32.vlgmr.msra.gmra.mrb[10].mxu1 %vm744_vm2, %v1090_v28 }
 0x5be   : > { %3179 = vmatmul.mubr.msk.f32.vlgmr.msra.gmra.mrb[4].mxu0 %vm744_vm2, %v1089_v29  ;;  %3205 = vmatprep.mubr.msk.f32.mxu1 %vm3708_vm1, %v3709_v17 }
 0x5bf   : > { %3194 = vmatprep.mubr.msk.f32.mxu0 %vm3708_vm1, %v3709_v17  ;;  %3327 = vmatpush3.bf16.msra.mxu0 %v3326_v34 }
 0x5c0   : > { %3328 = vmatprep.subr.bf16.mxu0 %v3707_v14  ;;  %3333 = vmatpush3.bf16.msra.mxu1 %v3332_v63 }
 0x5c1   : > { %3334 = vmatprep.subr.bf16.mxu1 %v3707_v14 }
 0x5c3   : > { %3330 = vmatpush3.bf16.msra.mxu0 %v3329_v37 }
 0x5c4   : > { %3337 = vmatprep.subr.bf16.mxu0 %v3707_v14 }
 0x628   : > { %v1163_v30 = vpop.f32.mrb[2].mxu0 }
 0x629   : > { %v3170_v31 = vpop.f32.mrb[3].mxu0 }
 0x688   : > { %v1239_v38 = vpop.f32.mrb[8].mxu1 }
 0x689   : > { %1396 = vrot.lane.b32.xlu1 %v1239_v38, %s4480_s12  ;;  %v3175_v39 = vpop.f32.mrb[9].mxu1  ;;  %s4527_s12 = sld [smem:[#allocation27_spill]] }
 0x68a   : > { %v2996_v39 = vld [vmem:[%s4526_s13] ss:$0 sm:$0xff] }
 0x690   : > { %v1391_v40 = vpop.f32.mrb[10].mxu1 }
 0x691   : > { %v1315_v41 = vpop.f32.mrb[4].mxu0  ;;  %1404 = vrot.lane.b32.xlu1 %v1391_v40, %s4478_s23  ;;  %v3185_v42 = vpop.f32.mrb[11].mxu1  ;;  %s4529_s23 = smov 120  }
 0x692   : > { %1400 = vrot.lane.b32.xlu0 %v1315_v41, %s4479_s29  ;;  %v3180_v43 = vpop.f32.mrb[5].mxu0  ;;  %s4531_s29 = smov 96  }
 0x6fb   : > { %v1397_v44 = vpop.permute.xlu1 %1396 }
 0x6fc   : > { %v1407_v45 = vsel %vm744_vm2, %v1163_v30, %v1397_v44 }
 0x703   : > { %v1405_v47 = vpop.permute.xlu1 %1404 }
 0x704   : > { %v1401_v46 = vpop.permute.xlu0 %1400 }
 0x705   : > { %v1409_v48 = vsel %vm1408_vm3, %v1407_v45, %v1401_v46 }
 0x706   : > { %v1411_v49 = vsel %vm1410_vm4, %v1409_v48, %v1405_v47 }
 0x707   : > { %3195 = vmatmul.mubr.msk.f32.vlgmr.msra.gmra.mrb[6].mxu0 %vm614_vm0, %v1411_v49 }
 0x708   : > { %3224 = vmatprep.mubr.msk.f32.mxu0 %vm3708_vm1, %v3709_v17  ;;  %3339 = vmatpush3.bf16.msra.mxu0 %v3338_v13 }
 0x709   : > { %3340 = vmatprep.subr.bf16.mxu0 %v3707_v14 }
 0x70c   : > { %3342 = vmatpush3.bf16.msra.mxu0 %v3341_v18 }
 0x70d   : > { %3343 = vmatprep.subr.bf16.mxu0 %v3707_v14 }
 0x710   : > { %3345 = vmatpush3.bf16.msra.mxu0 %v3344_v21 }
 0x711   : > { %3346 = vmatprep.subr.bf16.mxu0 %v3707_v14 }
 0x714   : > { %3348 = vmatpush3.bf16.msra.mxu0 %v3347_v24 }
 0x715   : > { %3248 = vmatprep.subr.mxu0 %v3709_v17 }
 0x7da   : > { %v1492_v51 = vpop.f32.mrb[6].mxu0 }
 0x7db   : > { %v1493_v52 = vadd.f32 %v2990_v50, %v1492_v51  ;;  %v3196_v53 = vpop.f32.mrb[7].mxu0  ;;  %v3000_v50 = vld [vmem:[%s4522_s5 + $0x20] sm:$0xff]  ;;  %v3001_v51 = vld [vmem:[%s4522_s5 + $0x28] sm:$0xff] }
 0x7dc   : > { %v3002_v53 = vld [vmem:[%s4522_s5 + $0x30] sm:$0xff] }
 0x7dd   : > { %v1496_v54 = vadd.f32 %v1493_v52, %v4039_v27  ;;  %v1528_v27 = vld [vmem:[%s4456_s11 + $0x10] sm:$0xff]  ;;  %v3350_v52 = vpack.c.bf16 %v3001_v51, %v3000_v50 }
 0x7de   : > { %v3335_v1 = vpack.c.bf16 %v1529_v0, %v1528_v27  ;;  %v3005_v0 = vld [vmem:[%s4523_s6 + $0x1] ss:$0 sm:$0xff] }
 0x7df   : > { %v1499_v55 = vsel %vm614_vm0, %v1496_v54, 0.0 }
 0x7e0   : > { %1500 = vadd.xlane.f32.xlu0 %v1499_v55  ;;  %3336 = vmatpush3.bf16.msra.mxu1 %v3335_v1 }
 0x7e1   : > { %3349 = vmatprep.subr.bf16.mxu1 %v3707_v14 }
 0x86d   : > { %v1501_v56 = vpop.xlane.xlu0 %1500 }
 0x86e   : > { %v1502_v57 = vmul.f32 0.03125, %v1501_v56 }
 0x870   : > { %v1503_v58 = vsub.f32 %v1496_v54, %v1502_v57  ;;  %v3003_v54 = vld [vmem:[%s4522_s5 + $0x38] sm:$0xff] }
 0x871   : > { %v3353_v55 = vpack.c.bf16 %v3003_v54, %v3002_v53 }
 0x872   : > { %v1504_v59 = vmul.f32 %v1503_v58, %v1503_v58 }
 0x874   : > { %v1505_v60 = vsel %vm614_vm0, %v1504_v59, 0.0 }
 0x875   : > { %1506 = vadd.xlane.f32.xlu1 %v1505_v60  ;;  %v2998_v60 = vld [vmem:[%s4527_s12] ss:$0 sm:$0xff] }
 0x902   : > { %v1507_v2 = vpop.xlane.xlu1 %1506 }
 0x903   : > { %v1508_v3 = vmul.f32 0.03125, %v1507_v2 }
 0x905   : > { %v1509_v4 = vadd.f32 1e-12, %v1508_v3 }
 0x907   : > { %3485 = vrsqrt.f32 %v1509_v4 }
 0x911   : > { %v3486_v5 = vpop.eup %3485 }
 0x912   : > { %v1511_v7 = vmul.f32 %v3486_v5, %v1503_v58 }
 0x914   : > { %v1518_v9 = vmul.f32 %v2992_v6, %v1511_v7 }
 0x916   : > { %v1525_v10 = vadd.f32 %v2993_v8, %v1518_v9 }
 0x918   : > { %3206 = vmatmul.mubr.msk.f32.vlgmr.msra.gmra.mrb[12].mxu1 %vm614_vm0, %v1525_v10 }
 0x919   : > { %3235 = vmatprep.mubr.msk.f32.mxu1 %vm3708_vm1, %v3709_v17  ;;  %3351 = vmatpush3.bf16.msra.mxu1 %v3350_v52 }
 0x91a   : > { %3352 = vmatprep.subr.bf16.mxu1 %v3707_v14 }
 0x91d   : > { %3354 = vmatpush3.bf16.msra.mxu1 %v3353_v55 }
 0x91e   : > { %3238 = vmatprep.subr.mxu1 %v3709_v17 }
 0x9eb   : > { %v1606_v26 = vpop.f32.mrb[12].mxu1 }
 0x9ec   : > { %v1607_v28 = vadd.f32 %v2994_v25, %v1606_v26  ;;  %v3207_v29 = vpop.f32.mrb[13].mxu1 }
 0x9ee   : > { %v1610_v30 = vmul.f32 %v1607_v28, %v1607_v28 }
 0x9f0   : > { %v1611_v31 = vmul.f32 %v1610_v30, %v1607_v28 }
 0x9f2   : > { %v1612_v32 = vmul.f32 0.044715, %v1611_v31 }
 0x9f4   : > { %v1613_v33 = vadd.f32 %v1612_v32, %v1607_v28 }
 0x9f6   : > { %v1614_v34 = vmul.f32 0.7978846, %v1613_v33 }
 0x9f8   : > { %3487 = vtanh.f32 %v1614_v34 }
 0xa02   : > { %v3488_v35 = vpop.eup %3487 }
 0xa03   : > { %v1616_v36 = vadd.f32 1.0, %v3488_v35 }
 0xa05   : > { %v1617_v37 = vmul.f32 0.5, %v1616_v36 }
 0xa07   : > { %v1618_v38 = vmul.f32 %v1617_v37, %v1607_v28 }
 0xa09   : > { %3225 = vmatmul.mubr.msk.f32.vlgmr.msra.gmra.mrb[8].mxu0 %vm1634_vm5, %v1618_v38 }
 0xa0a   : > { %3250 = vmatprep.mubr.msk.f32.mxu0 %vm3708_vm1, %v3709_v17 }
 0xadc   : > { %v1704_v40 = vpop.f32.mrb[8].mxu0 }
 0xadd   : > { %v1705_v41 = vadd.f32 %v2996_v39, %v1704_v40  ;;  %v3226_v42 = vpop.f32.mrb[9].mxu0 }
 0xadf   : > { %v1708_v43 = vadd.f32 %v1705_v41, %v1525_v10 }
 0xae1   : > { %v1711_v44 = vsel %vm614_vm0, %v1708_v43, 0.0 }
 0xae2   : > { %1712 = vadd.xlane.f32.xlu0 %v1711_v44 }
 0xb6f   : > { %v1713_v45 = vpop.xlane.xlu0 %1712 }
 0xb70   : > { %v1714_v46 = vmul.f32 0.03125, %v1713_v45 }
 0xb72   : > { %v1715_v47 = vsub.f32 %v1708_v43, %v1714_v46 }
 0xb74   : > { %v1716_v48 = vmul.f32 %v1715_v47, %v1715_v47 }
 0xb76   : > { %v1717_v49 = vsel %vm614_vm0, %v1716_v48, 0.0 }
 0xb77   : > { %1718 = vadd.xlane.f32.xlu0 %v1717_v49 }
 0xc04   : > { %v1719_v56 = vpop.xlane.xlu0 %1718 }
 0xc05   : > { %v1720_v57 = vmul.f32 0.03125, %v1719_v56 }
 0xc07   : > { %v1721_v58 = vadd.f32 1e-12, %v1720_v57 }
 0xc09   : > { %3489 = vrsqrt.f32 %v1721_v58 }
 0xc13   : > { %v3490_v59 = vpop.eup %3489 }
 0xc14   : > { %v1723_v61 = vmul.f32 %v3490_v59, %v1715_v47 }
 0xc16   : > { %v1730_v63 = vmul.f32 %v2998_v60, %v1723_v61 }
 0xc18   : > { %v4225_v27 = vadd.f32 %v2999_v62, %v1730_v63 }
 0xc1a   : > { %3236 = vmatmul.mubr.msk.f32.vlgmr.msra.gmra.mrb[14].mxu1 %vm614_vm0, %v4225_v27 }
 0xc1b   : > { %3240 = vmatprep.mubr.msk.f32.mxu1 %vm3708_vm1, %v3709_v17 }
 0xced   : > { %v1820_v1 = vpop.f32.mrb[14].mxu1 }
 0xcee   : > { %v1821_v2 = vadd.f32 %v3005_v0, %v1820_v1  ;;  %v3237_v3 = vpop.f32.mrb[15].mxu1 }
 0xcf0   : > { %1835 = vrot.lane.b32.xlu0 %v1821_v2, %s3712_s0  ;;  %1833 = vrot.lane.b32.xlu1 %v1821_v2, %s4529_s23  ;;  %v1824_v4 = vmul.f32 0.35355338, %v1821_v2 }
 0xcf4   : > { %1837 = vrot.lane.b32.xlu1 %v1821_v2, %s4530_s19 }
 0xcf8   : > { %1839 = vrot.lane.b32.xlu1 %v1821_v2, %s4531_s29 }
 0xcfc   : > { %1826 = vrot.lane.b32.xlu1 %v1824_v4, %s4529_s23 }
 0xd62   : > { %v4239_v5 = vpop.permute.xlu1 %1833  ;;  %v4243_v6 = vpop.permute.xlu0 %1835 }
 0xd63   : > { %1915 = vrot.lane.b32.xlu0 %v4239_v5, %s4531_s29 }
 0xd66   : > { %v4245_v7 = vpop.permute.xlu1 %1837 }
 0xd67   : > { %1991 = vrot.lane.b32.xlu0 %v4243_v6, %s4531_s29  ;;  %2067 = vrot.lane.b32.xlu1 %v4245_v7, %s4531_s29  ;;  %s4536_s29 = sld [smem:[#allocation29_spill]] }
 0xd6a   : > { %v1840_v8 = vpop.permute.xlu1 %1839 }
 0xd6b   : > { %3239 = vmatpush3.xpose.msk.msra.mxu1 %vm744_vm2, %v1840_v8  ;;  %1828 = vrot.lane.b32.xlu0 %v1824_v4, %s3712_s0  ;;  %s4532_s0 = smov 64   ;;  %v3022_v8 = vld [vmem:[%s4452_s7 + $0x38] sm:$0xff] }
 0xd6c   : > { %1830 = vrot.lane.b32.xlu1 %v1824_v4, %s4530_s19  ;;  %3243 = vmatprep.subr.mxu1 %v3709_v17 }
 0xd6e   : > { %3241 = vmatmul.mubr.msk.f32.vlgmr.msra.gmra.mrb[16].mxu1 %vm744_vm2, %v1824_v4  ;;  %v1827_v9 = vpop.permute.xlu1 %1826  ;;  %v3019_v4 = vld [vmem:[%s4452_s7 + $0x20] sm:$0xff] }
 0xd6f   : > { %3245 = vmatprep.mubr.msk.f32.mxu1 %vm3708_vm1, %v3709_v17 }
 0xdd5   : > { %v1916_v10 = vpop.permute.xlu0 %1915 }
 0xdd6   : > { %3244 = vmatpush3.xpose.msk.msra.mxu1 %vm744_vm2, %v1916_v10 }
 0xdd7   : > { %3253 = vmatprep.subr.mxu1 %v3709_v17 }
 0xdd9   : > { %v1992_v11 = vpop.permute.xlu0 %1991  ;;  %v2068_v12 = vpop.permute.xlu1 %2067  ;;  %3246 = vmatmul.mubr.msk.f32.vlgmr.msra.gmra.mrb[18].mxu1 %vm744_vm2, %v1827_v9 }
 0xdda   : > { %3249 = vmatpush3.xpose.msk.msra.mxu0 %vm744_vm2, %v1992_v11  ;;  %3254 = vmatpush3.xpose.msk.msra.mxu1 %vm744_vm2, %v2068_v12 }
 0xddb   : > { %3255 = vmatprep.mubr.msk.f32.mxu1 %vm3708_vm1, %v3709_v17  ;;  %3258 = vmatprep.subr.mxu0 %v3709_v17 }
 0xddc   : > { %3263 = vmatprep.subr.mxu1 %v3709_v17 }
 0xddd   : > { %v1829_v13 = vpop.permute.xlu0 %1828 }
 0xdde   : > { %v1831_v15 = vpop.permute.xlu1 %1830  ;;  %3251 = vmatmul.mubr.msk.f32.vlgmr.msra.gmra.mrb[10].mxu0 %vm744_vm2, %v1829_v13 }
 0xddf   : > { %3256 = vmatmul.mubr.msk.f32.vlgmr.msra.gmra.mrb[20].mxu1 %vm744_vm2, %v1831_v15  ;;  %3260 = vmatprep.mubr.msk.f32.mxu0 %vm3708_vm1, %v3709_v17 }
 0xde0   : > { %3265 = vmatprep.mubr.msk.f32.mxu1 %vm3708_vm1, %v3709_v17 }
 0xe41   : > { %v1911_v16 = vpop.f32.mrb[16].mxu1 }
 0xe42   : > { %v3242_v18 = vpop.f32.mrb[17].mxu1  ;;  %v2143_v19 = vsel %vm744_vm2, %v1911_v16, -inf }
 0xe43   : > { %2144 = vmax.xlane.f32.xlu0 %v2143_v19 }
 0xeac   : > { %v1987_v20 = vpop.f32.mrb[18].mxu1 }
 0xead   : > { %v3247_v21 = vpop.f32.mrb[19].mxu1  ;;  %v2146_v22 = vsel %vm744_vm2, %v1987_v20, -inf }
 0xeae   : > { %2147 = vmax.xlane.f32.xlu1 %v2146_v22 }
 0xeb1   : > { %v2063_v23 = vpop.f32.mrb[10].mxu0 }
 0xeb2   : > { %v2139_v24 = vpop.f32.mrb[20].mxu1  ;;  %v3252_v25 = vpop.f32.mrb[11].mxu0  ;;  %v2149_v26 = vsel %vm744_vm2, %v2063_v23, -inf }
 0xeb3   : > { %v3257_v28 = vpop.f32.mrb[21].mxu1  ;;  %2150 = vmax.xlane.f32.xlu0 %v2149_v26  ;;  %v2152_v29 = vsel %vm744_vm2, %v2139_v24, -inf }
 0xeb7   : > { %2153 = vmax.xlane.f32.xlu0 %v2152_v29 }
 0xebf   : > { %2187 = vrot.lane.b32.xlu1 %v1821_v2, %s4532_s0 }
 0xed0   : > { %v2145_v30 = vpop.xlane.xlu0 %2144 }
 0xed1   : > { %v2155_v31 = vsub.f32 %v1911_v16, %v2145_v30 }
 0xed3   : > { %v2159_v32 = vmul.f32 1.442695, %v2155_v31 }
 0xed5   : > { %3491 = vpow2.f32 %v2159_v32 }
 0xedf   : > { %v3492_v33 = vpop.eup %3491 }
 0xee0   : > { %v2167_v34 = vsel %vm744_vm2, %v3492_v33, 0.0 }
 0xee3   : > { %2168 = vadd.xlane.f32.xlu1 %v2167_v34 }
 0xf3b   : > { %v2148_v35 = vpop.xlane.xlu1 %2147 }
 0xf3c   : > { %v2156_v36 = vsub.f32 %v1987_v20, %v2148_v35 }
 0xf3e   : > { %v2161_v37 = vmul.f32 1.442695, %v2156_v36  ;;  %v3031_v36 = vld [vmem:[%s4456_s11 + $0x28] sm:$0xff] }
 0xf3f   : > { %v2188_v38 = vpop.permute.xlu1 %2187 }
 0xf40   : > { %3493 = vpow2.f32 %v2161_v37  ;;  %v2151_v39 = vpop.xlane.xlu0 %2150  ;;  %3259 = vmatpush3.msra.mxu0 %v2188_v38  ;;  %v3033_v38 = vld [vmem:[%s4456_s11 + $0x38] sm:$0xff] }
 0xf41   : > { %v2157_v40 = vsub.f32 %v2063_v23, %v2151_v39  ;;  %3268 = vmatprep.subr.mxu0 %v3709_v17 }
 0xf43   : > { %v2163_v41 = vmul.f32 1.442695, %v2157_v40 }
 0xf44   : > { %v2154_v42 = vpop.xlane.xlu0 %2153 }
 0xf45   : > { %3495 = vpow2.f32 %v2163_v41  ;;  %v2158_v43 = vsub.f32 %v2139_v24, %v2154_v42  ;;  %v3024_v24 = vld [vmem:[%s4453_s8 + $0x1] ss:$0 sm:$0xff] }
 0xf47   : > { %v2165_v44 = vmul.f32 1.442695, %v2158_v43 }
 0xf49   : > { %3497 = vpow2.f32 %v2165_v44  ;;  %v3028_v44 = vld [vmem:[%s4454_s9 + $0x1] ss:$0 sm:$0xff] }
 0xf4a   : > { %v3494_v45 = vpop.eup %3493 }
 0xf4b   : > { %v2170_v46 = vsel %vm744_vm2, %v3494_v45, 0.0 }
 0xf4c   : > { %2171 = vadd.xlane.f32.xlu0 %v2170_v46  ;;  %v3029_v46 = vld [vmem:[%s4455_s10 + $0x1] ss:$0 sm:$0xff] }
 0xf4f   : > { %v3496_v47 = vpop.eup %3495 }
 0xf50   : > { %v2173_v48 = vsel %vm744_vm2, %v3496_v47, 0.0 }
 0xf51   : > { %2174 = vadd.xlane.f32.xlu1 %v2173_v48 }
 0xf53   : > { %v3498_v49 = vpop.eup %3497 }
 0xf54   : > { %v2176_v50 = vsel %vm744_vm2, %v3498_v49, 0.0 }
 0xf55   : > { %2177 = vadd.xlane.f32.xlu0 %v2176_v50  ;;  %v3038_v50 = vld [vmem:[%s4524_s22 + $0x48] sm:$0xff] }
 0xf62   : > { %2339 = vrot.lane.b32.xlu1 %v4243_v6, %s4532_s0 }
 0xf66   : > { %2415 = vrot.lane.b32.xlu1 %v4245_v7, %s4532_s0  ;;  %v3021_v7 = vld [vmem:[%s4452_s7 + $0x30] sm:$0xff] }
 0xf67   : > { %v3359_v9 = vpack.c.bf16 %v3022_v8, %v3021_v7 }
 0xf6b   : > { %2263 = vrot.lane.b32.xlu0 %v4239_v5, %s4532_s0  ;;  %v3020_v5 = vld [vmem:[%s4452_s7 + $0x28] sm:$0xff] }
 0xf6c   : > { %v3356_v6 = vpack.c.bf16 %v3020_v5, %v3019_v4 }
 0xf70   : > { %v2169_v51 = vpop.xlane.xlu1 %2168 }
 0xf71   : > { %3499 = vrcp.f32 %v2169_v51 }
 0xf7b   : > { %v3500_v52 = vpop.eup %3499 }
 0xf7c   : > { %v2183_v53 = vmul.f32 %v3500_v52, %v3492_v33  ;;  %v3039_v52 = vld [vmem:[%s4524_s22 + $0x50] sm:$0xff] }
 0xf7e   : > { %3261 = vmatmul.mubr.msk.f32.vlgmr.msra.gmra.mrb[12].mxu0 %vm744_vm2, %v2183_v53  ;;  %v3040_v53 = vld [vmem:[%s4524_s22 + $0x58] sm:$0xff] }
 0xf7f   : > { %3270 = vmatprep.mubr.msk.f32.mxu0 %vm3708_vm1, %v3709_v17 }
 0xfd9   : > { %v2172_v54 = vpop.xlane.xlu0 %2171 }
 0xfda   : > { %3501 = vrcp.f32 %v2172_v54  ;;  %v3371_v54 = vpack.c.bf16 %v3040_v53, %v3039_v52 }
 0xfde   : > { %v2175_v55 = vpop.xlane.xlu1 %2174 }
 0xfdf   : > { %3503 = vrcp.f32 %v2175_v55  ;;  %v3041_v55 = vld [vmem:[%s4524_s22 + $0x60] sm:$0xff] }
 0xfe2   : > { %v2340_v56 = vpop.permute.xlu1 %2339  ;;  %v2178_v57 = vpop.xlane.xlu0 %2177 }
 0xfe3   : > { %3505 = vrcp.f32 %v2178_v57  ;;  %3269 = vmatpush3.msra.mxu0 %v2340_v56  ;;  %v3042_v56 = vld [vmem:[%s4524_s22 + $0x68] sm:$0xff] }
 0xfe4   : > { %v3502_v58 = vpop.eup %3501  ;;  %3355 = vmatprep.subr.bf16.mxu0 %v3707_v14  ;;  %v3374_v57 = vpack.c.bf16 %v3042_v56, %v3041_v55 }
 0xfe5   : > { %v2184_v59 = vmul.f32 %v3502_v58, %v3494_v45  ;;  %v3043_v58 = vld [vmem:[%s4524_s22 + $0x70] sm:$0xff] }
 0xfe6   : > { %v2264_v60 = vpop.permute.xlu0 %2263  ;;  %v2416_v61 = vpop.permute.xlu1 %2415 }
 0xfe7   : > { %3264 = vmatpush3.msra.mxu1 %v2264_v60 }
 0xfe8   : > { %3266 = vmatmul.mubr.msk.f32.vlgmr.msra.gmra.mrb[22].mxu1 %vm744_vm2, %v2184_v59  ;;  %3273 = vmatprep.subr.mxu1 %v3709_v17  ;;  %v3044_v59 = vld [vmem:[%s4524_s22 + $0x78] sm:$0xff] }
 0xfe9   : > { %v3504_v62 = vpop.eup %3503  ;;  %3274 = vmatpush3.msra.mxu1 %v2416_v61  ;;  %3275 = vmatprep.mubr.msk.f32.mxu1 %vm3708_vm1, %v3709_v17  ;;  %v3377_v60 = vpack.c.bf16 %v3044_v59, %v3043_v58  ;;  %v3035_v61 = vld [vmem:[%s4525_s15 + $0x1] ss:$0 sm:$0xff] }
 0xfea   : > { %v2185_v63 = vmul.f32 %v3504_v62, %v3496_v47  ;;  %3361 = vmatprep.subr.bf16.mxu1 %v3707_v14 }
 0xfec   : > { %3271 = vmatmul.mubr.msk.f32.vlgmr.msra.gmra.mrb[14].mxu0 %vm744_vm2, %v2185_v63 }
 0xfed   : > { %v3506_v0 = vpop.eup %3505  ;;  %3286 = vmatprep.mubr.msk.f32.mxu0 %vm3708_vm1, %v3709_v17  ;;  %3357 = vmatpush3.bf16.msra.mxu0 %v3356_v6 }
 0xfee   : > { %v2186_v1 = vmul.f32 %v3506_v0, %v3498_v49  ;;  %3358 = vmatprep.subr.bf16.mxu0 %v3707_v14  ;;  %v3037_v49 = vld [vmem:[%s4524_s22 + $0x40] sm:$0xff] }
 0xfef   : > { %v3368_v51 = vpack.c.bf16 %v3038_v50, %v3037_v49 }
 0xff0   : > { %3276 = vmatmul.mubr.msk.f32.vlgmr.msra.gmra.mrb[24].mxu1 %vm744_vm2, %v2186_v1 }
 0xff1   : > { %3297 = vmatprep.mubr.msk.f32.mxu1 %vm3708_vm1, %v3709_v17  ;;  %3360 = vmatpush3.bf16.msra.mxu0 %v3359_v9  ;;  %v3046_v9 = vld [vmem:[%s4526_s13 + $0x1] ss:$0 sm:$0xff] }
 0xff2   : > { %3367 = vmatprep.subr.bf16.mxu0 %v3707_v14 }
0x1051   : > { %v2259_v2 = vpop.f32.mrb[12].mxu0 }
0x1052   : > { %v3262_v3 = vpop.f32.mrb[13].mxu0 }
0x10bb   : > { %v2335_v10 = vpop.f32.mrb[22].mxu1 }
0x10bc   : > { %2492 = vrot.lane.b32.xlu0 %v2335_v10, %s4533_s1  ;;  %v3267_v11 = vpop.f32.mrb[23].mxu1  ;;  %s2853_s1 = scalar_lea.sflag [#allocation4], %s3998_s3 }
0x10bf   : > { %v2411_v12 = vpop.f32.mrb[14].mxu0 }
0x10c0   : > { %2496 = vrot.lane.b32.xlu1 %v2411_v12, %s4534_s14  ;;  %v3272_v13 = vpop.f32.mrb[15].mxu0  ;;  %s3052_s14 = sshll.u32 %s3830_s28, 4  ;;  %s3718_s28 = smov [#allocation10]  }
0x10c1   : > { %s4401_s0 = scalar_lea.hbm %s4536_s29, %s3052_s14  ;;  %s3631_s5 = sshll.u32 %s3718_s28, 4  ;;  %s3632_s5 = int_to_ptr.vmem [resolvable:$false] %s3631_s5 }
0x10c2   : > { %s3633_s6 = scalar_lea.vmem %s3632_s5, 32 }
0x10c3   : > { %v2487_v15 = vpop.f32.mrb[24].mxu1 }
0x10c4   : > { %2500 = vrot.lane.b32.xlu0 %v2487_v15, %s4535_s24  ;;  %v3277_v16 = vpop.f32.mrb[25].mxu1  ;;  %s600_s24 = scalar_lea.vmem [#allocation10], %s3998_s3 }
0x10c5   : > { %s2865_s2 = sshll.u32 %s600_s24, 4  ;;  %s4403_s2 = int_to_ptr.vmem [resolvable:$true] %s2865_s2 }
0x10c6   : > { %s3627_s4 = scalar_lea.vmem %s4403_s2, 16  ;;  %p3634_p3 = scmp.lt.s32.totalorder %s4403_s2, %s3632_s5 }
0x10c7   : > { %p3628_p1 = scmp.ne.s32.totalorder %s4403_s2, %s3627_s4  ;;  %p3635_p7 = scmp.lt.s32.totalorder %s3633_s6, %s3627_s4 }
0x10c9   : > { %p3629_p4 = pnand %p3628_p1, %p3953_p6  ;;  %p3636_p10 = por %p3635_p7, %p3634_p3 }
0x10cb   : > { %p3630_p8 = pneg %p3629_p4 }
0x10cd   : > { %p3637_p13 = pnand %p3636_p10, %p3630_p8 }
0x112e   : > { %v2493_v18 = vpop.permute.xlu0 %2492 }
0x112f   : > { %v2503_v20 = vsel %vm744_vm2, %v2259_v2, %v2493_v18 }
0x1132   : > { %v2497_v19 = vpop.permute.xlu1 %2496 }
0x1133   : > { %v2504_v21 = vsel %vm1408_vm3, %v2503_v20, %v2497_v19 }
0x1136   : > { %v2501_v22 = vpop.permute.xlu0 %2500 }
0x1137   : > { %v2505_v23 = vsel %vm1410_vm4, %v2504_v21, %v2501_v22 }
0x1138   : > { %3287 = vmatmul.mubr.msk.f32.vlgmr.msra.gmra.mrb[16].mxu0 %vm614_vm0, %v2505_v23 }
0x1139   : > { %3316 = vmatprep.mubr.msk.f32.mxu0 %vm3708_vm1, %v3709_v17  ;;  %v3030_v17 = vld [vmem:[%s4456_s11 + $0x20] sm:$0xff]  ;;  %3369 = vmatpush3.bf16.msra.mxu0 %v3368_v51 }
0x113a   : > { %v3362_v37 = vpack.c.bf16 %v3031_v36, %v3030_v17  ;;  %3370 = vmatprep.subr.bf16.mxu0 %v3707_v14 }
0x113c   : > { %3363 = vmatpush3.bf16.msra.mxu1 %v3362_v37 }
0x113d   : > { %3364 = vmatprep.subr.bf16.mxu1 %v3707_v14  ;;  %3372 = vmatpush3.bf16.msra.mxu0 %v3371_v54 }
0x113e   : > { %3373 = vmatprep.subr.bf16.mxu0 %v3707_v14 }
0x1141   : > { %3375 = vmatpush3.bf16.msra.mxu0 %v3374_v57 }
0x1142   : > { %3376 = vmatprep.subr.bf16.mxu0 %v3707_v14 }
0x1145   : > { %3378 = vmatpush3.bf16.msra.mxu0 %v3377_v60 }
0x120b   : > { %v2588_v25 = vpop.f32.mrb[16].mxu0 }
0x120c   : > { %v2589_v26 = vadd.f32 %v3024_v24, %v2588_v25  ;;  %v3288_v28 = vpop.f32.mrb[17].mxu0 }
0x120e   : > { %v2592_v29 = vadd.f32 %v2589_v26, %v4225_v27  ;;  %v3032_v27 = vld [vmem:[%s4456_s11 + $0x30] sm:$0xff]  ;;  %v3050_v26 = vld [vmem:[%s4527_s12 + $0x1] ss:$0 sm:$0xff] }
0x120f   : > { %v3365_v39 = vpack.c.bf16 %v3033_v38, %v3032_v27 }
0x1210   : > { %v2597_v30 = vsel %vm614_vm0, %v2592_v29, 0.0 }
0x1211   : > { %2598 = vadd.xlane.f32.xlu1 %v2597_v30  ;;  %3366 = vmatpush3.bf16.msra.mxu1 %v3365_v39 }
0x129e   : > { %v2599_v31 = vpop.xlane.xlu1 %2598 }
0x129f   : > { %v2600_v32 = vmul.f32 0.03125, %v2599_v31 }
0x12a1   : > { %v2601_v33 = vsub.f32 %v2592_v29, %v2600_v32  ;;  %v3051_v29 = vld [vmem:[%s4528_s18 + $0x1] ss:$0 sm:$0xff] }
0x12a3   : > { %v2602_v34 = vmul.f32 %v2601_v33, %v2601_v33 }
0x12a5   : > { %v2603_v35 = vsel %vm614_vm0, %v2602_v34, 0.0 }
0x12a6   : > { %2604 = vadd.xlane.f32.xlu0 %v2603_v35 }
0x1333   : > { %v2605_v40 = vpop.xlane.xlu0 %2604 }
0x1334   : > { %v2606_v41 = vmul.f32 0.03125, %v2605_v40 }
0x1336   : > { %v2607_v42 = vadd.f32 1e-12, %v2606_v41 }
0x1338   : > { %3507 = vrsqrt.f32 %v2607_v42 }
0x1342   : > { %v3508_v43 = vpop.eup %3507 }
0x1343   : > { %v2609_v45 = vmul.f32 %v3508_v43, %v2601_v33 }
0x1345   : > { %v2616_v47 = vmul.f32 %v3028_v44, %v2609_v45 }
0x1347   : > { %v2623_v48 = vadd.f32 %v3029_v46, %v2616_v47 }
0x1349   : > { %3298 = vmatmul.mubr.msk.f32.vlgmr.msra.gmra.mrb[26].mxu1 %vm614_vm0, %v2623_v48 }
0x141c   : > { %v2706_v62 = vpop.f32.mrb[26].mxu1 }
0x141d   : > { %v2707_v63 = vadd.f32 %v3035_v61, %v2706_v62  ;;  %v3299_v0 = vpop.f32.mrb[27].mxu1 }
0x141f   : > { %v2710_v1 = vmul.f32 %v2707_v63, %v2707_v63 }
0x1421   : > { %v2711_v2 = vmul.f32 %v2710_v1, %v2707_v63 }
0x1423   : > { %v2712_v14 = vmul.f32 0.044715, %v2711_v2 }
0x1425   : > { %v2713_v3 = vadd.f32 %v2712_v14, %v2707_v63 }
0x1427   : > { %v2714_v4 = vmul.f32 0.7978846, %v2713_v3 }
0x1429   : > { %3509 = vtanh.f32 %v2714_v4 }
0x1433   : > { %v3510_v5 = vpop.eup %3509 }
0x1434   : > { %v2716_v6 = vadd.f32 1.0, %v3510_v5 }
0x1436   : > { %v2717_v7 = vmul.f32 0.5, %v2716_v6 }
0x1438   : > { %v2718_v8 = vmul.f32 %v2717_v7, %v2707_v63 }
0x143a   : > { %3317 = vmatmul.mubr.msk.f32.vlgmr.msra.gmra.mrb[18].mxu0 %vm1634_vm5, %v2718_v8 }
0x150d   : > { %v2805_v10 = vpop.f32.mrb[18].mxu0 }
0x150e   : > { %v2806_v11 = vadd.f32 %v3046_v9, %v2805_v10  ;;  %v3318_v12 = vpop.f32.mrb[19].mxu0 }
0x1510   : > { %v2809_v13 = vadd.f32 %v2806_v11, %v2623_v48 }
0x1512   : > { %v2814_v15 = vsel %vm614_vm0, %v2809_v13, 0.0 }
0x1513   : > { %2815 = vadd.xlane.f32.xlu0 %v2814_v15 }
0x15a0   : > { %v2816_v16 = vpop.xlane.xlu0 %2815 }
0x15a1   : > { %v2817_v18 = vmul.f32 0.03125, %v2816_v16 }
0x15a3   : > { %v2818_v19 = vsub.f32 %v2809_v13, %v2817_v18 }
0x15a5   : > { %v2819_v20 = vmul.f32 %v2818_v19, %v2818_v19 }
0x15a7   : > { %v2820_v21 = vsel %vm614_vm0, %v2819_v20, 0.0 }
0x15a8   : > { %2821 = vadd.xlane.f32.xlu1 %v2820_v21 }
0x1635   : > { %v2822_v22 = vpop.xlane.xlu1 %2821 }
0x1636   : > { %v2823_v23 = vmul.f32 0.03125, %v2822_v22 }
0x1638   : > { %v2824_v24 = vadd.f32 1e-12, %v2823_v23 }
0x163a   : > { %3511 = vrsqrt.f32 %v2824_v24 }
0x1644   : > { %v3512_v25 = vpop.eup %3511 }
0x1645   : > { %v2826_v28 = vmul.f32 %v3512_v25, %v2818_v19 }
0x1647   : > { %v2833_v30 = vmul.f32 %v3050_v26, %v2826_v28 }
0x1649   : > { %v2840_v31 = vadd.f32 %v3051_v29, %v2833_v30 }
0x164b   : > { %v2841_v32 = vsel %vm614_vm0, %v2840_v31, 0.0 }
0x164c   : > { %v2842_v33 = vrot.slane %v2841_v32, 4 }
0x164e   : > { %v2843_v34 = vadd.f32 %v2842_v33, %v2841_v32 }
0x1650   : > { %v2844_v35 = vrot.slane %v2843_v34, 2 }
0x1652   : > { %v2845_v17 = vadd.f32 %v2844_v35, %v2843_v34 }
0x1654   : > { %v2846_v36 = vrot.slane %v2845_v17, 1 }
0x1656   : > { %v2847_v37 = vadd.f32 %v2846_v36, %v2845_v17 }
0x1658   : > { %v2849_v27 = vmul.f32 0.125, %v2847_v37 }
0x165a   : > { %2851 = vst.msk [vmem:[%s600_s24] sm:$0x1] %vm2850_vm6, %v2849_v27 }
0x165b   : > { %3640 = shalt.err (!%p3637_p13)
}
0x165c   : > { %s3641_s3 = scalar_lea.hbm %s4401_s0, 16  ;;  %s3645_s23 = scalar_lea.hbm %s4536_s29, 32 }
0x165d   : > { %p3642_p5 = scmp.ne.s32.totalorder %s4401_s0, %s3641_s3  ;;  %p3646_p11 = scmp.lt.u32.totalorder %s4401_s0, %s4536_s29 }
0x165e   : > { %p3647_p12 = scmp.lt.u32.totalorder %s3645_s23, %s3641_s3  ;;  %p3649_p1 = scmp.lt.u32.totalorder %s3641_s3, %s4401_s0 }
0x165f   : > { %p3643_p0 = pnand %p3642_p5, %p3953_p6 }
0x1660   : > { %p3648_p2 = por %p3647_p12, %p3646_p11 }
0x1661   : > { %p3644_p9 = pneg %p3643_p0 }
0x1662   : > { %p3650_p4 = por %p3649_p1, %p3648_p2 }
0x1664   : > { %p3651_p8 = pnand %p3650_p4, %p3644_p9 }
0x1666   : > { %3654 = shalt.err (!%p3651_p8)
}
0x1667   : > { %3393 = dma.vmem_to_hbm [thread:$0]  (%p3953_p6), %s4403_s2, 16, %s4401_s0, %s2853_s1  }
0x1668 PF: > { %s4537_s4 = sld [smem:[#allocation15_spill]]  ;;  %s4538_s6 = sld [smem:[#allocation16_spill]] }
0x1669   : > { %p4540_p7 = scmp.ge.s32.totalorder %s3701_s27, 2 }
0x166e   : > { %s2877_s28 = sand.u32 1, %s4537_s4   ;;  %p4539_p3 = scmp.ne.s32.totalorder %s4538_s6, 0 }
0x166f   : > { %s2878_s14 = scalar_lea.sflag [#allocation4], %s2877_s28 }
0x1670   : > { %p3410_p10 = pnand %p4540_p7, %p4539_p3 }
0x1672   : > { %3684 = dma.done.wait (!%p3410_p10), %s2878_s14, 16  }
0x1673   : > { %3686 = vsyncadd (!%p3410_p10), %s2878_s14, 4294967280  ;;  %p32_p13 = scmp.ge.s32.totalorder %s3939_s20, 4   ;;  %s4541_s24 = smov %s3693_s25 }
0x1674   : > { %s4542_s25 = smov %s3697_s26  ;;  %s4543_s26 = smov %s3949_s16 }
0x1675   : > { %s4544_s27 = smov %s3939_s20  ;;  %34 = sbr.rel (!%p32_p13) target bundleno = 21 (0x15), region = 157 }
0x167c   :  { %2882 = vsyncpa [#allocation3], 1 }
0x167d   :  { %2884 = vsyncpa [#allocation3 + $0x1], 1 }
0x167e   :  { %2885 = vsyncpa [#allocation6], 1 }
0x167f   :  { %2886 = vsyncpa [#allocation9], 1 }
0x1680   :  { %2887 = vsyncpa [#allocation4], 1 }
0x1681   :  { %2889 = vsyncpa [#allocation4 + $0x1], 1 }

</bundles_post_ra>
